<compile_context>
chip_gen: v7x
topology: tpu7x:2x2x1
jax: 0.10.0
libtpu: 0.0.40
codegen_flags: <defaults>
</compile_context>

<pallas_src>
import functools

import jax
import jax.numpy as jnp
import numpy as np
from jax.experimental import pallas as pl
from jax.experimental.pallas import tpu as pltpu

EPS = 1e-5


def _round_up(v, m):
    return ((v + m - 1) // m) * m


def _block_kernel(*refs, num_layers, H, W, Cp, Sp, Cout_p):
    """Fused UpsampleDenseBlock for one batch element.

    refs layout:
      refs[0]              : x        (1, Cp, Sp)     input, channel-padded, lane-padded
      refs[1]              : col_mask (1, Sp)         1.0 on real columns, 0.0 elsewhere
      refs[2]              : vec      (Cp, 3*L)       packed [s1, b1, b2] per layer
      refs[3+2l], refs[4+2l]: per layer l: w1k (Cp, 9*Cp), w2 (Cp, Cp)
      refs[3+2L]           : out      (1, Cout_p, Sp)
      refs[4+2L], refs[5+2L]: pad scratch (Cp, P), im2col scratch (9*Cp, Sp)
    """
    Wp = W + 2

    x_ref = refs[0]
    m_ref = refs[1]
    vec_ref = refs[2]
    w_refs = refs[3:3 + 2 * num_layers]
    o_ref = refs[3 + 2 * num_layers]
    pad_ref = refs[4 + 2 * num_layers]
    im_ref = refs[5 + 2 * num_layers]

    col_mask = m_ref[...]                 # (1, Sp)
    cur = x_ref[0]                        # (Cp, Sp)  lane-dense

    # Zero the padded-image scratch ONCE per grid step: the interior
    # [Wp+1, Wp+1+Sp) is fully rewritten each layer, border lanes never change.
    pad_ref[...] = jnp.zeros_like(pad_ref)

    for l in range(num_layers):
        w1 = w_refs[2 * l][...]           # (Cp, 9*Cp)  3x3 conv, BN2 scale folded in
        w2 = w_refs[2 * l + 1][...]       # (Cp, Cp)    1x1 conv, next BN1 scale folded in
        s1 = vec_ref[:, 3 * l + 0:3 * l + 1]   # (Cp, 1)
        b1 = vec_ref[:, 3 * l + 1:3 * l + 2]   # (Cp, 1)
        b2 = vec_ref[:, 3 * l + 2:3 * l + 3]   # (Cp, 1)

        # BN1 + ReLU.  For l >= 1 the BN1 scale was folded into the previous
        # layer's 1x1 weights, so only the bias add remains.  col_mask zeroes the
        # two extension columns per image row and the Sp-S lane padding so the
        # conv sees exact zero padding.
        pre = cur * s1 + b1 if l == 0 else cur + b1
        act = jnp.maximum(pre, 0.0) * col_mask                     # (Cp, Sp)

        # Place act at lane offset Wp+1 inside the zeroed (H+2, W+2) image:
        # pixel (h, w) lands at padded (h+1, w+1); the masked extension columns
        # land exactly on padding positions that must be zero.
        pad_ref[:, Wp + 1:Wp + 1 + Sp] = act

        # im2col: tap (dy, dx) is a pure lane offset dy*Wp + dx; stack the 9
        # shifted views along the contraction (sublane) axis -> (9*Cp, Sp).
        for t in range(9):
            off = (t // 3) * Wp + (t % 3)
            im_ref[t * Cp:(t + 1) * Cp, :] = pad_ref[:, off:off + Sp]

        # 3x3 conv as a single deep matmul (K = 9*Cp), then BN2 bias + ReLU.
        acc = jnp.dot(w1, im_ref[...], preferred_element_type=jnp.float32)   # (Cp, Sp)
        hid = jnp.maximum(acc + b2, 0.0)

        # 1x1 conv == channel matmul.  Dropout: inference mode -> identity.
        cur = jnp.dot(w2, hid, preferred_element_type=jnp.float32)           # (Cp, Sp)

    # Only the (padded) final output channels are written back to HBM.
    o_ref[0] = cur[:Cout_p, :].astype(o_ref.dtype)


def _prep_params(block_params, Cp):
    """Fold BN stats / reshape torch weights into kernel layout (channels padded to Cp)."""
    num_layers = len(block_params)

    folded = []
    for p in block_params:
        g1, be1, rm1, rv1, W1, g2, be2, rm2, rv2, W2 = p
        s1 = g1 / jnp.sqrt(rv1 + EPS)
        b1 = be1 - rm1 * s1
        s2 = g2 / jnp.sqrt(rv2 + EPS)
        b2 = be2 - rm2 * s2
        # Fold BN2 scale into the 3x3 conv output channels.
        folded.append([s1, b1, W1 * s2[:, None, None, None], b2, W2[:, :, 0, 0]])

    # Fold the next layer's BN1 scale into this layer's 1x1 output channels
    # (no nonlinearity in between -> exact).
    for l in range(num_layers - 1):
        s1_next = folded[l + 1][0]
        folded[l][4] = folded[l][4] * s1_next[:, None]
        folded[l + 1][0] = jnp.ones_like(s1_next)   # kernel skips the mul for l >= 1

    vec_cols, w_list = [], []
    for (s1, b1, W1f, b2, W2m) in folded:
        Cin, Cmid, Cout = s1.shape[0], b2.shape[0], W2m.shape[0]
        # torch OIHW -> (Cmid, 3, 3, Cin); K index = (dy*3+dx)*Cp + c after padding.
        w1k = jnp.transpose(W1f, (0, 2, 3, 1))
        w1k = jnp.pad(w1k, ((0, Cp - Cmid), (0, 0), (0, 0), (0, Cp - Cin)))
        w1k = w1k.reshape(Cp, 9 * Cp).astype(jnp.float32)
        w2 = jnp.pad(W2m, ((0, Cp - Cout), (0, Cp - Cmid))).astype(jnp.float32)
        w_list += [w1k, w2]
        vec_cols += [jnp.pad(s1, (0, Cp - Cin)),
                     jnp.pad(b1, (0, Cp - Cin)),
                     jnp.pad(b2, (0, Cp - Cmid))]
    vec = jnp.stack(vec_cols, axis=1).astype(jnp.float32)        # (Cp, 3*num_layers)
    return vec, w_list


def upsample_dense_block(x, block_params):
    """x: (N, C, H, W) float32 NCHW (same layout as the PyTorch module)."""
    N, C0, H, W = x.shape
    num_layers = len(block_params)

    # Common padded channel count (multiple of 8 -> sublane-tile aligned everywhere).
    chans = [C0]
    for p in block_params:
        chans += [p[0].shape[0], p[5].shape[0], p[9].shape[0]]   # Cin, Cmid, Cout
    Cp = max(8, _round_up(max(chans), 8))
    cout_final = block_params[-1][9].shape[0]
    Cout_p = max(8, _round_up(cout_final, 8))

    Wp = W + 2
    S = H * Wp
    Sp = _round_up(S, 128)                    # lane-dense activation width
    P = _round_up(2 * Wp + 2 + Sp, 128)       # padded-image scratch (covers all tap reads)

    # Channel-pad + widen each image row by 2 zero columns, flatten spatial onto
    # lanes, then lane-pad to Sp.
    xw = jnp.pad(x.astype(jnp.float32), ((0, 0), (0, Cp - C0), (0, 0), (0, 2)))
    xw = xw.reshape(N, Cp, S)
    xw = jnp.pad(xw, ((0, 0), (0, 0), (0, Sp - S)))

    # 1.0 on real columns, 0.0 on the 2 extension columns of each row and the lane pad.
    row_mask = jnp.concatenate([jnp.ones((W,), jnp.float32), jnp.zeros((2,), jnp.float32)])
    col_mask = jnp.pad(jnp.tile(row_mask, H), (0, Sp - S)).reshape(1, Sp)

    vec, w_list = _prep_params(block_params, Cp)

    kernel = functools.partial(_block_kernel, num_layers=num_layers, H=H, W=W,
                               Cp=Cp, Sp=Sp, Cout_p=Cout_p)

    in_specs = [
        pl.BlockSpec((1, Cp, Sp), lambda n: (n, 0, 0)),            # x
        pl.BlockSpec((1, Sp), lambda n: (0, 0)),                   # col_mask
        pl.BlockSpec((Cp, 3 * num_layers), lambda n: (0, 0)),      # packed s1/b1/b2
    ]
    for _ in range(num_layers):
        in_specs += [
            pl.BlockSpec((Cp, 9 * Cp), lambda n: (0, 0)),          # w1k (BN2-folded)
            pl.BlockSpec((Cp, Cp), lambda n: (0, 0)),              # w2  (next-BN1-folded)
        ]

    out = pl.pallas_call(
        kernel,
        out_shape=jax.ShapeDtypeStruct((N, Cout_p, Sp), jnp.float32),
        grid=(N,),
        in_specs=in_specs,
        out_specs=pl.BlockSpec((1, Cout_p, Sp), lambda n: (n, 0, 0)),
        scratch_shapes=[
            pltpu.VMEM((Cp, P), jnp.float32),                      # zero-padded image
            pltpu.VMEM((9 * Cp, Sp), jnp.float32),                 # im2col buffer
        ],
        compiler_params=pltpu.CompilerParams(dimension_semantics=("parallel",)),
    )(xw, col_mask, vec, *w_list)

    # Drop the lane padding / extension columns and the padded channels (cheap crop).
    out = out[:, :, :S].reshape(N, Cout_p, H, Wp)
    return out[:, :cout_final, :, :W]


# ----------------------------- pure-JAX reference -----------------------------
def _layer_ref(x, raw_params):
    g1, be1, rm1, rv1, W1, g2, be2, rm2, rv2, W2 = raw_params

    def bn(v, g, b, m, s):
        return (v - m[None, :, None, None]) * (
            g[None, :, None, None] / jnp.sqrt(s[None, :, None, None] + EPS)
        ) + b[None, :, None, None]

    dn = ("NCHW", "OIHW", "NCHW")
    y = jnp.maximum(bn(x, g1, be1, rm1, rv1), 0.0)
    y = jax.lax.conv_general_dilated(y, W1, (1, 1), ((1, 1), (1, 1)), dimension_numbers=dn)
    y = jnp.maximum(bn(y, g2, be2, rm2, rv2), 0.0)
    y = jax.lax.conv_general_dilated(y, W2, (1, 1), ((0, 0), (0, 0)), dimension_numbers=dn)
    return y


if __name__ == "__main__":
    # Module config: UpsampleDenseBlock(num_layers=2, input_features=16, bn_size=4,
    #                                   shrink_rate=4, drop_rate=0.0)   (inference mode)
    N, H, Wd = 2, 16, 16
    num_layers, input_features, bn_size, shrink_rate = 2, 16, 4, 4

    key = jax.random.PRNGKey(0)
    key, kx = jax.random.split(key)
    x = jax.random.normal(kx, (N, input_features, H, Wd), jnp.float32)   # NCHW

    block_params = []
    for i in range(num_layers):
        Cin = input_features - i * shrink_rate
        Cmid = bn_size * shrink_rate
        Cout = Cin - shrink_rate
        key, *ks = jax.random.split(key, 11)
        g1 = jax.random.uniform(ks[0], (Cin,), minval=0.5, maxval=1.5)
        be1 = jax.random.normal(ks[1], (Cin,)) * 0.1
        rm1 = jax.random.normal(ks[2], (Cin,)) * 0.1
        rv1 = jax.random.uniform(ks[3], (Cin,), minval=0.5, maxval=1.5)
        W1 = jax.random.normal(ks[4], (Cmid, Cin, 3, 3)) * 0.1   # torch (O, I, kH, kW)
        g2 = jax.random.uniform(ks[5], (Cmid,), minval=0.5, maxval=1.5)
        be2 = jax.random.normal(ks[6], (Cmid,)) * 0.1
        rm2 = jax.random.normal(ks[7], (Cmid,)) * 0.1
        rv2 = jax.random.uniform(ks[8], (Cmid,), minval=0.5, maxval=1.5)
        W2 = jax.random.normal(ks[9], (Cout, Cmid, 1, 1)) * 0.1  # torch (O, I, 1, 1)
        block_params.append((g1, be1, rm1, rv1, W1, g2, be2, rm2, rv2, W2))

    out = jax.jit(upsample_dense_block)(x, block_params)
    out = jax.block_until_ready(out)

    ref = x
    for p in block_params:
        ref = _layer_ref(ref, p)
    ref = jax.block_until_ready(ref)

    expected_shape = (N, input_features - num_layers * shrink_rate, H, Wd)
    assert out.shape == ref.shape == expected_shape
    np.testing.assert_allclose(np.asarray(out), np.asarray(ref), rtol=1e-3, atol=1e-3)
    print("KERNEL_OK")
</pallas_src>

<mosaic_0001>
module attributes {stable_mosaic.version = 11 : i64} {
  func.func @_block_kernel(%arg0: i32, %arg1: memref<1x16x384xf32, #tpu.memory_space<vmem>>, %arg2: memref<1x384xf32, #tpu.memory_space<vmem>>, %arg3: memref<16x6xf32, #tpu.memory_space<vmem>>, %arg4: memref<16x144xf32, #tpu.memory_space<vmem>>, %arg5: memref<16x16xf32, #tpu.memory_space<vmem>>, %arg6: memref<16x144xf32, #tpu.memory_space<vmem>>, %arg7: memref<16x16xf32, #tpu.memory_space<vmem>>, %arg8: memref<1x8x384xf32, #tpu.memory_space<vmem>>, %arg9: memref<16x512xf32, #tpu.memory_space<vmem>>, %arg10: memref<144x384xf32, #tpu.memory_space<vmem>>) attributes {dimension_semantics = [#tpu.dimension_semantics<parallel>], iteration_bounds = array<i64: 2>, scalar_prefetch = 0 : i64, scratch_operands = 2 : i64, tpu.core_type = #tpu.core_type<tc>, window_params = [{transform_indices = @transform_0, window_bounds = array<i64: 1, 16, 384>}, {pipeline_mode = #tpu.pipeline_mode<synchronous>, transform_indices = @transform_1, window_bounds = array<i64: 1, 384>}, {pipeline_mode = #tpu.pipeline_mode<synchronous>, transform_indices = @transform_2, window_bounds = array<i64: 16, 6>}, {pipeline_mode = #tpu.pipeline_mode<synchronous>, transform_indices = @transform_3, window_bounds = array<i64: 16, 144>}, {pipeline_mode = #tpu.pipeline_mode<synchronous>, transform_indices = @transform_4, window_bounds = array<i64: 16, 16>}, {pipeline_mode = #tpu.pipeline_mode<synchronous>, transform_indices = @transform_5, window_bounds = array<i64: 16, 144>}, {pipeline_mode = #tpu.pipeline_mode<synchronous>, transform_indices = @transform_6, window_bounds = array<i64: 16, 16>}, {transform_indices = @transform_7, window_bounds = array<i64: 1, 8, 384>}]} {
    %c0 = arith.constant 0 : index
    %c0_0 = arith.constant 0 : index
    %0 = vector.load %arg2[%c0, %c0_0] : memref<1x384xf32, #tpu.memory_space<vmem>>, vector<1x384xf32>
    %c0_1 = arith.constant 0 : index
    %c0_2 = arith.constant 0 : index
    %c0_3 = arith.constant 0 : index
    %1 = vector.load %arg1[%c0_1, %c0_2, %c0_3] : memref<1x16x384xf32, #tpu.memory_space<vmem>>, vector<1x16x384xf32>
    %2 = vector.shape_cast %1 : vector<1x16x384xf32> to vector<16x384xf32>
    %cst = arith.constant 0.000000e+00 : f32
    %3 = vector.broadcast %cst : f32 to vector<16x512xf32>
    %c0_4 = arith.constant 0 : index
    %c0_5 = arith.constant 0 : index
    %4 = vector.load %arg9[%c0_4, %c0_5] : memref<16x512xf32, #tpu.memory_space<vmem>>, vector<16x512xf32>
    tpu.vector_store %arg9[%c0_4, %c0_5], %3 {strides = array<i32>} : memref<16x512xf32, #tpu.memory_space<vmem>>, vector<16x512xf32>,
    %c0_6 = arith.constant 0 : index
    %c0_7 = arith.constant 0 : index
    %5 = vector.load %arg4[%c0_6, %c0_7] : memref<16x144xf32, #tpu.memory_space<vmem>>, vector<16x144xf32>
    %c0_8 = arith.constant 0 : index
    %c0_9 = arith.constant 0 : index
    %6 = vector.load %arg5[%c0_8, %c0_9] : memref<16x16xf32, #tpu.memory_space<vmem>>, vector<16x16xf32>
    %c0_10 = arith.constant 0 : index
    %c0_11 = arith.constant 0 : index
    %7 = vector.load %arg3[%c0_10, %c0_11] : memref<16x6xf32, #tpu.memory_space<vmem>>, vector<16x1xf32>
    %c0_12 = arith.constant 0 : index
    %c1 = arith.constant 1 : index
    %8 = vector.load %arg3[%c0_12, %c1] : memref<16x6xf32, #tpu.memory_space<vmem>>, vector<16x1xf32>
    %c0_13 = arith.constant 0 : index
    %c2 = arith.constant 2 : index
    %9 = vector.load %arg3[%c0_13, %c2] : memref<16x6xf32, #tpu.memory_space<vmem>>, vector<16x1xf32>
    %10 = vector.broadcast %7 : vector<16x1xf32> to vector<16x384xf32>
    %11 = arith.mulf %2, %10 : vector<16x384xf32>
    %12 = vector.broadcast %8 : vector<16x1xf32> to vector<16x384xf32>
    %13 = arith.addf %11, %12 : vector<16x384xf32>
    %cst_14 = arith.constant 0.000000e+00 : f32
    %14 = vector.broadcast %cst_14 : f32 to vector<16x384xf32>
    %15 = arith.maximumf %13, %14 : vector<16x384xf32>
    %16 = vector.broadcast %0 : vector<1x384xf32> to vector<16x384xf32>
    %17 = arith.mulf %15, %16 : vector<16x384xf32>
    %c0_15 = arith.constant 0 : index
    %c19 = arith.constant 19 : index
    %18 = vector.load %arg9[%c0_15, %c19] : memref<16x512xf32, #tpu.memory_space<vmem>>, vector<16x384xf32>
    tpu.vector_store %arg9[%c0_15, %c19], %17 {strides = array<i32>} : memref<16x512xf32, #tpu.memory_space<vmem>>, vector<16x384xf32>,
    %c0_16 = arith.constant 0 : index
    %c0_17 = arith.constant 0 : index
    %19 = vector.load %arg9[%c0_16, %c0_17] : memref<16x512xf32, #tpu.memory_space<vmem>>, vector<16x384xf32>
    %c0_18 = arith.constant 0 : index
    %c0_19 = arith.constant 0 : index
    %20 = vector.load %arg10[%c0_18, %c0_19] : memref<144x384xf32, #tpu.memory_space<vmem>>, vector<16x384xf32>
    tpu.vector_store %arg10[%c0_18, %c0_19], %19 {strides = array<i32>} : memref<144x384xf32, #tpu.memory_space<vmem>>, vector<16x384xf32>,
    %c0_20 = arith.constant 0 : index
    %c1_21 = arith.constant 1 : index
    %21 = vector.load %arg9[%c0_20, %c1_21] : memref<16x512xf32, #tpu.memory_space<vmem>>, vector<16x384xf32>
    %c16 = arith.constant 16 : index
    %c0_22 = arith.constant 0 : index
    %22 = vector.load %arg10[%c16, %c0_22] : memref<144x384xf32, #tpu.memory_space<vmem>>, vector<16x384xf32>
    tpu.vector_store %arg10[%c16, %c0_22], %21 {strides = array<i32>} : memref<144x384xf32, #tpu.memory_space<vmem>>, vector<16x384xf32>,
    %c0_23 = arith.constant 0 : index
    %c2_24 = arith.constant 2 : index
    %23 = vector.load %arg9[%c0_23, %c2_24] : memref<16x512xf32, #tpu.memory_space<vmem>>, vector<16x384xf32>
    %c32 = arith.constant 32 : index
    %c0_25 = arith.constant 0 : index
    %24 = vector.load %arg10[%c32, %c0_25] : memref<144x384xf32, #tpu.memory_space<vmem>>, vector<16x384xf32>
    tpu.vector_store %arg10[%c32, %c0_25], %23 {strides = array<i32>} : memref<144x384xf32, #tpu.memory_space<vmem>>, vector<16x384xf32>,
    %c0_26 = arith.constant 0 : index
    %c18 = arith.constant 18 : index
    %25 = vector.load %arg9[%c0_26, %c18] : memref<16x512xf32, #tpu.memory_space<vmem>>, vector<16x384xf32>
    %c48 = arith.constant 48 : index
    %c0_27 = arith.constant 0 : index
    %26 = vector.load %arg10[%c48, %c0_27] : memref<144x384xf32, #tpu.memory_space<vmem>>, vector<16x384xf32>
    tpu.vector_store %arg10[%c48, %c0_27], %25 {strides = array<i32>} : memref<144x384xf32, #tpu.memory_space<vmem>>, vector<16x384xf32>,
    %c0_28 = arith.constant 0 : index
    %c19_29 = arith.constant 19 : index
    %27 = vector.load %arg9[%c0_28, %c19_29] : memref<16x512xf32, #tpu.memory_space<vmem>>, vector<16x384xf32>
    %c64 = arith.constant 64 : index
    %c0_30 = arith.constant 0 : index
    %28 = vector.load %arg10[%c64, %c0_30] : memref<144x384xf32, #tpu.memory_space<vmem>>, vector<16x384xf32>
    tpu.vector_store %arg10[%c64, %c0_30], %27 {strides = array<i32>} : memref<144x384xf32, #tpu.memory_space<vmem>>, vector<16x384xf32>,
    %c0_31 = arith.constant 0 : index
    %c20 = arith.constant 20 : index
    %29 = vector.load %arg9[%c0_31, %c20] : memref<16x512xf32, #tpu.memory_space<vmem>>, vector<16x384xf32>
    %c80 = arith.constant 80 : index
    %c0_32 = arith.constant 0 : index
    %30 = vector.load %arg10[%c80, %c0_32] : memref<144x384xf32, #tpu.memory_space<vmem>>, vector<16x384xf32>
    tpu.vector_store %arg10[%c80, %c0_32], %29 {strides = array<i32>} : memref<144x384xf32, #tpu.memory_space<vmem>>, vector<16x384xf32>,
    %c0_33 = arith.constant 0 : index
    %c36 = arith.constant 36 : index
    %31 = vector.load %arg9[%c0_33, %c36] : memref<16x512xf32, #tpu.memory_space<vmem>>, vector<16x384xf32>
    %c96 = arith.constant 96 : index
    %c0_34 = arith.constant 0 : index
    %32 = vector.load %arg10[%c96, %c0_34] : memref<144x384xf32, #tpu.memory_space<vmem>>, vector<16x384xf32>
    tpu.vector_store %arg10[%c96, %c0_34], %31 {strides = array<i32>} : memref<144x384xf32, #tpu.memory_space<vmem>>, vector<16x384xf32>,
    %c0_35 = arith.constant 0 : index
    %c37 = arith.constant 37 : index
    %33 = vector.load %arg9[%c0_35, %c37] : memref<16x512xf32, #tpu.memory_space<vmem>>, vector<16x384xf32>
    %c112 = arith.constant 112 : index
    %c0_36 = arith.constant 0 : index
    %34 = vector.load %arg10[%c112, %c0_36] : memref<144x384xf32, #tpu.memory_space<vmem>>, vector<16x384xf32>
    tpu.vector_store %arg10[%c112, %c0_36], %33 {strides = array<i32>} : memref<144x384xf32, #tpu.memory_space<vmem>>, vector<16x384xf32>,
    %c0_37 = arith.constant 0 : index
    %c38 = arith.constant 38 : index
    %35 = vector.load %arg9[%c0_37, %c38] : memref<16x512xf32, #tpu.memory_space<vmem>>, vector<16x384xf32>
    %c128 = arith.constant 128 : index
    %c0_38 = arith.constant 0 : index
    %36 = vector.load %arg10[%c128, %c0_38] : memref<144x384xf32, #tpu.memory_space<vmem>>, vector<16x384xf32>
    tpu.vector_store %arg10[%c128, %c0_38], %35 {strides = array<i32>} : memref<144x384xf32, #tpu.memory_space<vmem>>, vector<16x384xf32>,
    %c0_39 = arith.constant 0 : index
    %c0_40 = arith.constant 0 : index
    %37 = vector.load %arg10[%c0_39, %c0_40] : memref<144x384xf32, #tpu.memory_space<vmem>>, vector<144x384xf32>
    %cst_41 = arith.constant dense<0.000000e+00> : vector<16x384xf32>
    %38 = tpu.matmul %5, %37, %cst_41 {dimension_numbers = #tpu.dot_dimension_numbers<[1], [0], [0], [1], [0, 0, 1, 1], [], []>} : vector<16x144xf32>, vector<144x384xf32>, vector<16x384xf32> -> vector<16x384xf32>
    %39 = vector.broadcast %9 : vector<16x1xf32> to vector<16x384xf32>
    %40 = arith.addf %38, %39 : vector<16x384xf32>
    %cst_42 = arith.constant 0.000000e+00 : f32
    %41 = vector.broadcast %cst_42 : f32 to vector<16x384xf32>
    %42 = arith.maximumf %40, %41 : vector<16x384xf32>
    %cst_43 = arith.constant dense<0.000000e+00> : vector<16x384xf32>
    %43 = tpu.matmul %6, %42, %cst_43 {dimension_numbers = #tpu.dot_dimension_numbers<[1], [0], [0], [1], [0, 0, 1, 1], [], []>} : vector<16x16xf32>, vector<16x384xf32>, vector<16x384xf32> -> vector<16x384xf32>
    %c0_44 = arith.constant 0 : index
    %c0_45 = arith.constant 0 : index
    %44 = vector.load %arg6[%c0_44, %c0_45] : memref<16x144xf32, #tpu.memory_space<vmem>>, vector<16x144xf32>
    %c0_46 = arith.constant 0 : index
    %c0_47 = arith.constant 0 : index
    %45 = vector.load %arg7[%c0_46, %c0_47] : memref<16x16xf32, #tpu.memory_space<vmem>>, vector<16x16xf32>
    %c0_48 = arith.constant 0 : index
    %c4 = arith.constant 4 : index
    %46 = vector.load %arg3[%c0_48, %c4] : memref<16x6xf32, #tpu.memory_space<vmem>>, vector<16x1xf32>
    %c0_49 = arith.constant 0 : index
    %c5 = arith.constant 5 : index
    %47 = vector.load %arg3[%c0_49, %c5] : memref<16x6xf32, #tpu.memory_space<vmem>>, vector<16x1xf32>
    %48 = vector.broadcast %46 : vector<16x1xf32> to vector<16x384xf32>
    %49 = arith.addf %43, %48 : vector<16x384xf32>
    %cst_50 = arith.constant 0.000000e+00 : f32
    %50 = vector.broadcast %cst_50 : f32 to vector<16x384xf32>
    %51 = arith.maximumf %49, %50 : vector<16x384xf32>
    %52 = vector.broadcast %0 : vector<1x384xf32> to vector<16x384xf32>
    %53 = arith.mulf %51, %52 : vector<16x384xf32>
    %c0_51 = arith.constant 0 : index
    %c19_52 = arith.constant 19 : index
    %54 = vector.load %arg9[%c0_51, %c19_52] : memref<16x512xf32, #tpu.memory_space<vmem>>, vector<16x384xf32>
    tpu.vector_store %arg9[%c0_51, %c19_52], %53 {strides = array<i32>} : memref<16x512xf32, #tpu.memory_space<vmem>>, vector<16x384xf32>,
    %c0_53 = arith.constant 0 : index
    %c0_54 = arith.constant 0 : index
    %55 = vector.load %arg9[%c0_53, %c0_54] : memref<16x512xf32, #tpu.memory_space<vmem>>, vector<16x384xf32>
    %c0_55 = arith.constant 0 : index
    %c0_56 = arith.constant 0 : index
    %56 = vector.load %arg10[%c0_55, %c0_56] : memref<144x384xf32, #tpu.memory_space<vmem>>, vector<16x384xf32>
    tpu.vector_store %arg10[%c0_55, %c0_56], %55 {strides = array<i32>} : memref<144x384xf32, #tpu.memory_space<vmem>>, vector<16x384xf32>,
    %c0_57 = arith.constant 0 : index
    %c1_58 = arith.constant 1 : index
    %57 = vector.load %arg9[%c0_57, %c1_58] : memref<16x512xf32, #tpu.memory_space<vmem>>, vector<16x384xf32>
    %c16_59 = arith.constant 16 : index
    %c0_60 = arith.constant 0 : index
    %58 = vector.load %arg10[%c16_59, %c0_60] : memref<144x384xf32, #tpu.memory_space<vmem>>, vector<16x384xf32>
    tpu.vector_store %arg10[%c16_59, %c0_60], %57 {strides = array<i32>} : memref<144x384xf32, #tpu.memory_space<vmem>>, vector<16x384xf32>,
    %c0_61 = arith.constant 0 : index
    %c2_62 = arith.constant 2 : index
    %59 = vector.load %arg9[%c0_61, %c2_62] : memref<16x512xf32, #tpu.memory_space<vmem>>, vector<16x384xf32>
    %c32_63 = arith.constant 32 : index
    %c0_64 = arith.constant 0 : index
    %60 = vector.load %arg10[%c32_63, %c0_64] : memref<144x384xf32, #tpu.memory_space<vmem>>, vector<16x384xf32>
    tpu.vector_store %arg10[%c32_63, %c0_64], %59 {strides = array<i32>} : memref<144x384xf32, #tpu.memory_space<vmem>>, vector<16x384xf32>,
    %c0_65 = arith.constant 0 : index
    %c18_66 = arith.constant 18 : index
    %61 = vector.load %arg9[%c0_65, %c18_66] : memref<16x512xf32, #tpu.memory_space<vmem>>, vector<16x384xf32>
    %c48_67 = arith.constant 48 : index
    %c0_68 = arith.constant 0 : index
    %62 = vector.load %arg10[%c48_67, %c0_68] : memref<144x384xf32, #tpu.memory_space<vmem>>, vector<16x384xf32>
    tpu.vector_store %arg10[%c48_67, %c0_68], %61 {strides = array<i32>} : memref<144x384xf32, #tpu.memory_space<vmem>>, vector<16x384xf32>,
    %c0_69 = arith.constant 0 : index
    %c19_70 = arith.constant 19 : index
    %63 = vector.load %arg9[%c0_69, %c19_70] : memref<16x512xf32, #tpu.memory_space<vmem>>, vector<16x384xf32>
    %c64_71 = arith.constant 64 : index
    %c0_72 = arith.constant 0 : index
    %64 = vector.load %arg10[%c64_71, %c0_72] : memref<144x384xf32, #tpu.memory_space<vmem>>, vector<16x384xf32>
    tpu.vector_store %arg10[%c64_71, %c0_72], %63 {strides = array<i32>} : memref<144x384xf32, #tpu.memory_space<vmem>>, vector<16x384xf32>,
    %c0_73 = arith.constant 0 : index
    %c20_74 = arith.constant 20 : index
    %65 = vector.load %arg9[%c0_73, %c20_74] : memref<16x512xf32, #tpu.memory_space<vmem>>, vector<16x384xf32>
    %c80_75 = arith.constant 80 : index
    %c0_76 = arith.constant 0 : index
    %66 = vector.load %arg10[%c80_75, %c0_76] : memref<144x384xf32, #tpu.memory_space<vmem>>, vector<16x384xf32>
    tpu.vector_store %arg10[%c80_75, %c0_76], %65 {strides = array<i32>} : memref<144x384xf32, #tpu.memory_space<vmem>>, vector<16x384xf32>,
    %c0_77 = arith.constant 0 : index
    %c36_78 = arith.constant 36 : index
    %67 = vector.load %arg9[%c0_77, %c36_78] : memref<16x512xf32, #tpu.memory_space<vmem>>, vector<16x384xf32>
    %c96_79 = arith.constant 96 : index
    %c0_80 = arith.constant 0 : index
    %68 = vector.load %arg10[%c96_79, %c0_80] : memref<144x384xf32, #tpu.memory_space<vmem>>, vector<16x384xf32>
    tpu.vector_store %arg10[%c96_79, %c0_80], %67 {strides = array<i32>} : memref<144x384xf32, #tpu.memory_space<vmem>>, vector<16x384xf32>,
    %c0_81 = arith.constant 0 : index
    %c37_82 = arith.constant 37 : index
    %69 = vector.load %arg9[%c0_81, %c37_82] : memref<16x512xf32, #tpu.memory_space<vmem>>, vector<16x384xf32>
    %c112_83 = arith.constant 112 : index
    %c0_84 = arith.constant 0 : index
    %70 = vector.load %arg10[%c112_83, %c0_84] : memref<144x384xf32, #tpu.memory_space<vmem>>, vector<16x384xf32>
    tpu.vector_store %arg10[%c112_83, %c0_84], %69 {strides = array<i32>} : memref<144x384xf32, #tpu.memory_space<vmem>>, vector<16x384xf32>,
    %c0_85 = arith.constant 0 : index
    %c38_86 = arith.constant 38 : index
    %71 = vector.load %arg9[%c0_85, %c38_86] : memref<16x512xf32, #tpu.memory_space<vmem>>, vector<16x384xf32>
    %c128_87 = arith.constant 128 : index
    %c0_88 = arith.constant 0 : index
    %72 = vector.load %arg10[%c128_87, %c0_88] : memref<144x384xf32, #tpu.memory_space<vmem>>, vector<16x384xf32>
    tpu.vector_store %arg10[%c128_87, %c0_88], %71 {strides = array<i32>} : memref<144x384xf32, #tpu.memory_space<vmem>>, vector<16x384xf32>,
    %c0_89 = arith.constant 0 : index
    %c0_90 = arith.constant 0 : index
    %73 = vector.load %arg10[%c0_89, %c0_90] : memref<144x384xf32, #tpu.memory_space<vmem>>, vector<144x384xf32>
    %cst_91 = arith.constant dense<0.000000e+00> : vector<16x384xf32>
    %74 = tpu.matmul %44, %73, %cst_91 {dimension_numbers = #tpu.dot_dimension_numbers<[1], [0], [0], [1], [0, 0, 1, 1], [], []>} : vector<16x144xf32>, vector<144x384xf32>, vector<16x384xf32> -> vector<16x384xf32>
    %75 = vector.broadcast %47 : vector<16x1xf32> to vector<16x384xf32>
    %76 = arith.addf %74, %75 : vector<16x384xf32>
    %cst_92 = arith.constant 0.000000e+00 : f32
    %77 = vector.broadcast %cst_92 : f32 to vector<16x384xf32>
    %78 = arith.maximumf %76, %77 : vector<16x384xf32>
    %cst_93 = arith.constant dense<0.000000e+00> : vector<16x384xf32>
    %79 = tpu.matmul %45, %78, %cst_93 {dimension_numbers = #tpu.dot_dimension_numbers<[1], [0], [0], [1], [0, 0, 1, 1], [], []>} : vector<16x16xf32>, vector<16x384xf32>, vector<16x384xf32> -> vector<16x384xf32>
    %80 = vector.extract_strided_slice %79 {offsets = [0, 0], sizes = [8, 384], strides = [1, 1]} : vector<16x384xf32> to vector<8x384xf32>
    %c0_94 = arith.constant 0 : index
    %c0_95 = arith.constant 0 : index
    %c0_96 = arith.constant 0 : index
    %81 = vector.load %arg8[%c0_94, %c0_95, %c0_96] : memref<1x8x384xf32, #tpu.memory_space<vmem>>, vector<1x8x384xf32>
    %82 = vector.shape_cast %81 : vector<1x8x384xf32> to vector<8x384xf32>
    %83 = vector.shape_cast %80 : vector<8x384xf32> to vector<1x8x384xf32>
    tpu.vector_store %arg8[%c0_94, %c0_95, %c0_96], %83 {strides = array<i32>} : memref<1x8x384xf32, #tpu.memory_space<vmem>>, vector<1x8x384xf32>,
    return
  }
  func.func @transform_0(%arg0: i32) -> (i32, i32, i32) {
    %c0_i32 = arith.constant 0 : i32
    %c0_i32_0 = arith.constant 0 : i32
    %c0_i32_1 = arith.constant 0 : i32
    return %arg0, %c0_i32, %c0_i32_0 : i32, i32, i32
  }
  func.func @transform_1(%arg0: i32) -> (i32, i32) {
    %c0_i32 = arith.constant 0 : i32
    %c0_i32_0 = arith.constant 0 : i32
    %c0_i32_1 = arith.constant 0 : i32
    return %c0_i32, %c0_i32_0 : i32, i32
  }
  func.func @transform_2(%arg0: i32) -> (i32, i32) {
    %c0_i32 = arith.constant 0 : i32
    %c0_i32_0 = arith.constant 0 : i32
    %c0_i32_1 = arith.constant 0 : i32
    return %c0_i32, %c0_i32_0 : i32, i32
  }
  func.func @transform_3(%arg0: i32) -> (i32, i32) {
    %c0_i32 = arith.constant 0 : i32
    %c0_i32_0 = arith.constant 0 : i32
    %c0_i32_1 = arith.constant 0 : i32
    return %c0_i32, %c0_i32_0 : i32, i32
  }
  func.func @transform_4(%arg0: i32) -> (i32, i32) {
    %c0_i32 = arith.constant 0 : i32
    %c0_i32_0 = arith.constant 0 : i32
    %c0_i32_1 = arith.constant 0 : i32
    return %c0_i32, %c0_i32_0 : i32, i32
  }
  func.func @transform_5(%arg0: i32) -> (i32, i32) {
    %c0_i32 = arith.constant 0 : i32
    %c0_i32_0 = arith.constant 0 : i32
    %c0_i32_1 = arith.constant 0 : i32
    return %c0_i32, %c0_i32_0 : i32, i32
  }
  func.func @transform_6(%arg0: i32) -> (i32, i32) {
    %c0_i32 = arith.constant 0 : i32
    %c0_i32_0 = arith.constant 0 : i32
    %c0_i32_1 = arith.constant 0 : i32
    return %c0_i32, %c0_i32_0 : i32, i32
  }
  func.func @transform_7(%arg0: i32) -> (i32, i32, i32) {
    %c0_i32 = arith.constant 0 : i32
    %c0_i32_0 = arith.constant 0 : i32
    %c0_i32_1 = arith.constant 0 : i32
    return %arg0, %c0_i32, %c0_i32_0 : i32, i32, i32
  }
}

</mosaic_0001>

<bundles_post_ra>
// kernel: tile.6
= control target key start
LH: loop header
LB: loop body
LE: loop exit
PB: predicated region body
PF: predicated region fallthrough
CT: control target
= control target key end

     0   :  { %s28_s0 = inlined_call_operand.vmem [shape: f32[18], index: 0, kind: input, shape index: {}]   ;;  %s29_s1 = inlined_call_operand.vmem [shape: f32[16,18], index: 1, kind: output, shape index: {}]  }
   0x1   :  { %v4_v0 = vld [vmem:[%s28_s0] ss:$0 sm:$0xff] }
   0x2   :  { %5 = vst [vmem:[%s29_s1] sm:$0xff] %v4_v0  ;;  %8 = vst [vmem:[%s29_s1 + $0x8] sm:$0xff] %v4_v0 }

// kernel: tile.7
= control target key start
LH: loop header
LB: loop body
LE: loop exit
PB: predicated region body
PF: predicated region fallthrough
CT: control target
= control target key end

     0   :  { %vm9_vm0 = vcmask 15360   ;;  %vm22_vm1 = vcmask 31744   ;;  %s155_s14 = smov 126   ;;  %s156_s15 = smov 108   ;;  %vm3_vm2 = vcmask 146432   ;;  %vm13_vm3 = vcmask 130048   ;;  %s237_s0 = inlined_call_operand.vmem [shape: f32[16,18], index: 0, kind: input, shape index: {}]   ;;  %s238_s1 = inlined_call_operand.vmem [shape: f32[288], index: 1, kind: output, shape index: {}]  }
   0x1   :  { %v123_v0 = vld [vmem:[%s237_s0 + $0x7] sm:$0x1]   ;;  %v127_v3 = vld [vmem:[%s237_s0 + $0x6] sm:$0x1]   ;;  %v125_v4 = vld [vmem:[%s237_s0 + $0xe] sm:$0x1]  }
   0x2   :  { %v124_v1 = vld [vmem:[%s237_s0 + $0x7] sm:$0x1]   ;;  %34 = vrot.lane.b32.xlu1 %v127_v3, %s156_s15  ;;  %v126_v5 = vld [vmem:[%s237_s0 + $0xe] sm:$0x1]   ;;  %v128_v7 = vld [vmem:[%s237_s0 + $0xd] sm:$0x1]  }
   0x3   :  { %v10_v2 = vsel %vm9_vm0, %v124_v1, %v123_v0  ;;  %v23_v6 = vsel %vm22_vm1, %v126_v5, %v125_v4  ;;  %s157_s20 = smov 124   ;;  %s158_s21 = smov 106   ;;  %v129_v8 = vld [vmem:[%s237_s0 + $0x5] sm:$0x1]   ;;  %v130_v9 = vld [vmem:[%s237_s0 + $0xc] sm:$0x1]  }
   0x4   :  { %11 = vrot.lane.b32.xlu0 %v10_v2, %s155_s14  ;;  %v2_v10 = vld [vmem:[%s237_s0] sm:$0x1]   ;;  %s159_s28 = smov 90   ;;  %s160_s29 = smov 88   ;;  %v131_v11 = vld [vmem:[%s237_s0 + $0x4] sm:$0x1]  }
   0x5   :  { %4 = vst.msk [vmem:[#allocation0] sm:$0x1] %vm3_vm2, %v2_v10   ;;  %v132_v12 = vld [vmem:[%s237_s0 + $0xb] sm:$0x1]   ;;  %s161_s5 = smov 72   ;;  %s162_s6 = smov 70  }
   0x6   :  { %40 = vrot.lane.b32.xlu1 %v128_v7, %s158_s21  ;;  %v133_v13 = vld [vmem:[%s237_s0 + $0x3] sm:$0x1]   ;;  %v134_v14 = vld [vmem:[%s237_s0 + $0xa] sm:$0x1]   ;;  %s163_s11 = smov 54   ;;  %s164_s12 = smov 52  }
   0x7   :  { %v135_v15 = vld [vmem:[%s237_s0 + $0x2] sm:$0x1]   ;;  %v136_v16 = vld [vmem:[%s237_s0 + $0x9] sm:$0x1]   ;;  %s165_s17 = smov 36   ;;  %s166_s18 = smov 34  }
   0x8   :  { %24 = vrot.lane.b32.xlu0 %v23_v6, %s157_s20  ;;  %v137_v17 = vld [vmem:[%s237_s0 + $0x1] sm:$0x1]   ;;  %v138_v18 = vld [vmem:[%s237_s0 + $0x8] sm:$0x1]   ;;  %s167_s23 = smov 18   ;;  %s168_s24 = smov 16  }
   0x9   :  { %v139_v19 = vld [vmem:[%s237_s0 + $0xf] sm:$0x1]   ;;  %s169_s0 = smov 14   ;;  %vm16_vm4 = vcmask 1048560   ;;  %vm36_vm5 = vcmask 1032032   ;;  %vm26_vm6 = vcmask 113664  }
   0xa   :  { %53 = vrot.lane.b32.xlu1 %v130_v9, %s160_s29  ;;  %vm29_vm7 = vcmask 1048544   ;;  %vm42_vm8 = vcmask 1015632   ;;  %vm49_vm9 = vcmask 884432   ;;  %vm55_vm10 = vcmask 868032  }
   0xb   :  { %vm62_vm11 = vcmask 736832   ;;  %vm68_vm12 = vcmask 720432   ;;  %vm75_vm13 = vcmask 589232   ;;  %vm81_vm14 = vcmask 572832  }
   0xc   :  { %47 = vrot.lane.b32.xlu0 %v129_v8, %s159_s28  ;;  %vm88_vm15 = vcmask 441632   ;;  %vm94_vm0 = vcmask 425232   ;;  %vm101_vm1 = vcmask 294032   ;;  %vm107_vm2 = vcmask 277632  }
   0xe   :  { %66 = vrot.lane.b32.xlu1 %v132_v12, %s162_s6 }
  0x10   :  { %60 = vrot.lane.b32.xlu0 %v131_v11, %s161_s5 }
  0x12   :  { %79 = vrot.lane.b32.xlu1 %v134_v14, %s164_s12 }
  0x14   :  { %73 = vrot.lane.b32.xlu0 %v133_v13, %s163_s11 }
  0x16   :  { %92 = vrot.lane.b32.xlu1 %v136_v16, %s166_s18 }
  0x18   :  { %86 = vrot.lane.b32.xlu0 %v135_v15, %s165_s17 }
  0x1a   :  { %105 = vrot.lane.b32.xlu1 %v138_v18, %s168_s24 }
  0x1c   :  { %99 = vrot.lane.b32.xlu0 %v137_v17, %s167_s23 }
  0x20   :  { %112 = vrot.lane.b32.xlu0 %v139_v19, %s169_s0 }
  0x74   :  { %v35_v21 = vpop.permute.xlu1 %34  }
  0x76   :  { %v12_v20 = vpop.permute.xlu0 %11  }
  0x77   :  { %15 = vst.msk [vmem:[#allocation0 + $0x1] sm:$0x1] %vm13_vm3, %v12_v20   ;;  %vm114_vm3 = vcmask 261232  }
  0x78   :  { %17 = vst.msk [vmem:[#allocation0] sm:$0x1] %vm16_vm4, %v12_v20   ;;  %v41_v23 = vpop.permute.xlu1 %40  }
  0x79   :  { %37 = vst.msk [vmem:[#allocation0] sm:$0x1] %vm36_vm5, %v35_v21  }
  0x7a   :  { %v25_v22 = vpop.permute.xlu0 %24  }
  0x7b   :  { %28 = vst.msk [vmem:[#allocation0 + $0x2] sm:$0x1] %vm26_vm6, %v25_v22  }
  0x7c   :  { %31 = vst.msk [vmem:[#allocation0 + $0x1] sm:$0x1] %vm29_vm7, %v25_v22   ;;  %v54_v25 = vpop.permute.xlu1 %53  }
  0x7d   :  { %44 = vst.msk [vmem:[#allocation0 + $0x1] sm:$0x1] %vm42_vm8, %v41_v23  }
  0x7e   :  { %v48_v24 = vpop.permute.xlu0 %47   ;;  %57 = vst.msk [vmem:[#allocation0 + $0x1] sm:$0x1] %vm55_vm10, %v54_v25  }
  0x7f   :  { %50 = vst.msk [vmem:[#allocation0] sm:$0x1] %vm49_vm9, %v48_v24  }
  0x80   :  { %v67_v27 = vpop.permute.xlu1 %66  }
  0x81   :  { %70 = vst.msk [vmem:[#allocation0 + $0x1] sm:$0x1] %vm68_vm12, %v67_v27  }
  0x82   :  { %v61_v26 = vpop.permute.xlu0 %60  }
  0x83   :  { %63 = vst.msk [vmem:[#allocation0] sm:$0x1] %vm62_vm11, %v61_v26  }
  0x84   :  { %v80_v29 = vpop.permute.xlu1 %79  }
  0x85   :  { %83 = vst.msk [vmem:[#allocation0 + $0x1] sm:$0x1] %vm81_vm14, %v80_v29  }
  0x86   :  { %v74_v28 = vpop.permute.xlu0 %73  }
  0x87   :  { %76 = vst.msk [vmem:[#allocation0] sm:$0x1] %vm75_vm13, %v74_v28  }
  0x88   :  { %v93_v31 = vpop.permute.xlu1 %92  }
  0x89   :  { %96 = vst.msk [vmem:[#allocation0 + $0x1] sm:$0x1] %vm94_vm0, %v93_v31  }
  0x8a   :  { %v87_v30 = vpop.permute.xlu0 %86  }
  0x8b   :  { %89 = vst.msk [vmem:[#allocation0] sm:$0x1] %vm88_vm15, %v87_v30  }
  0x8c   :  { %v106_v33 = vpop.permute.xlu1 %105  }
  0x8d   :  { %109 = vst.msk [vmem:[#allocation0 + $0x1] sm:$0x1] %vm107_vm2, %v106_v33  }
  0x8e   :  { %v100_v32 = vpop.permute.xlu0 %99  }
  0x8f   :  { %102 = vst.msk [vmem:[#allocation0] sm:$0x1] %vm101_vm1, %v100_v32  }
  0x92   :  { %v113_v34 = vpop.permute.xlu0 %112  }
  0x93   :  { %116 = vst.msk [vmem:[#allocation0 + $0x2] sm:$0x1] %vm114_vm3, %v113_v34  }
  0x9a   :  { %v120_v35 = vld [vmem:[#allocation0] sm:$0xf] }
  0x9b   :  { %122 = vst [vmem:[%s238_s1] sm:$0xf] %v120_v35 }

// kernel: upsample_dense_block.1
= control target key start
LH: loop header
LB: loop body
LE: loop exit
PB: predicated region body
PF: predicated region fallthrough
CT: control target
= control target key end

     0   :  { %s2731_s24 = smov 0   ;;  %s3161_s0 = inlined_call_operand.vmem [shape: f32[2,16,384], index: 0, kind: input, shape index: {}]   ;;  %s3162_s1 = inlined_call_operand.vmem [shape: f32[1,384], index: 1, kind: input, shape index: {}]   ;;  %s3163_s2 = inlined_call_operand.vmem [shape: f32[16,6], index: 2, kind: input, shape index: {}]   ;;  %s3164_s3 = inlined_call_operand.vmem [shape: f32[16,144], index: 3, kind: input, shape index: {}]   ;;  %s3165_s4 = inlined_call_operand.vmem [shape: f32[16,16], index: 4, kind: input, shape index: {}]   ;;  %s3166_s5 = inlined_call_operand.vmem [shape: f32[16,144], index: 5, kind: input, shape index: {}]   ;;  %s3167_s6 = inlined_call_operand.vmem [shape: f32[16,16], index: 6, kind: input, shape index: {}]   ;;  %s3168_s7 = inlined_call_operand.vmem [shape: f32[2,8,384], index: 7, kind: output, shape index: {}]  }
   0x1 LB: > { %s2124_s25 = sadd.s32 4294967295, %s2673_s24   ;;  %p2128_p0 = scmp.ge.s32.totalorder %s2673_s24, 1  ;;  %s2673_s24 = sphi %s2731_s24, %s17_s24  }
   0x2   : > { %p237_p1 = scmp.lt.s32.totalorder %s2673_s24, 3 }
   0x4   : > { %p238_p2 = pnand %p2128_p0, %p237_p1 }
   0x5   : > { %v2742_v0 = vld [vmem:[%s3163_s2] sm:$0xff] (!%p238_p2)  ;;  %v2675_v1 = vmov (!%p238_p2), 1   ;;  %v2676_v2 = vmov (!%p238_p2), 0   ;;  %v2749_v3 = vld [vmem:[%s3163_s2 + $0x8] sm:$0xff] (!%p238_p2)  ;;  %p269_p3 = scmp.lt.s32.totalorder (!%p238_p2), %s2124_s25, 1  ;;  %v339_v4 = vlaneseq (!%p238_p2)  ;;  %v2677_v6 = vmov (!%p238_p2), 0.0  }
   0x6   : > { %241 = sbr.rel (%p238_p2) target bundleno = 1657 (0x679), region = 48  ;;  %2340 = vset.pattern.permute.xlu1 (!%p238_p2), %v2675_v1  ;;  %2339 = vset.pattern.permute.xlu0 (!%p238_p2), %v2676_v2  ;;  %286 = vst [vmem:[#allocation2] sm:$0xff] (!%p238_p2), %v2677_v6  ;;  %289 = vst [vmem:[#allocation2 + $0x18] sm:$0xff] (!%p238_p2), %v2677_v6  ;;  %v279_v13 = vld [vmem:[%s3162_s1] sm:$0x7] (!%p238_p2)  ;;  %v2678_v37 = vmov (!%p238_p2), 0.0|0.0  }
   0x7   : > { %319 = vperm.xlu1 (!%p238_p2), %2340, %v2742_v0   ;;  %304 = vperm.xlu0 (!%p238_p2), %2339, %v2742_v0   ;;  %v340_v5 = vshrl.u32 (!%p238_p2), %v339_v4, 7  ;;  %290 = vst [vmem:[#allocation2 + $0x20] sm:$0xff] (!%p238_p2), %v2677_v6  ;;  %293 = vst [vmem:[#allocation2 + $0x38] sm:$0xff] (!%p238_p2), %v2677_v6  ;;  %s2679_s13 = smov (!%p238_p2), 19   ;;  %vm391_vm0 = vcmask (!%p238_p2), 1047704   ;;  %vm378_vm1 = vcmask (!%p238_p2), 154624  }
   0x8   : > { %2207 = vmatprep.subr.bf16.mxu1 (!%p238_p2), %v2678_v37  ;;  %s2680_s14 = smov (!%p238_p2), 126   ;;  %s2681_s15 = smov (!%p238_p2), 127   ;;  %vm882_vm2 = vcmask (!%p238_p2), 130048   ;;  %vm444_vm3 = vcmask (!%p238_p2), 1039360   ;;  %vm495_vm4 = vcmask (!%p238_p2), 1031168   ;;  %vm546_vm5 = vcmask (!%p238_p2), 900096  }
   0x9   : > { %v345_v10 = vsub.s32 (!%p238_p2), 1, %v340_v5  ;;  %v341_v14 = vsub.s32 (!%p238_p2), 0, %v340_v5  ;;  %v349_v27 = vsub.s32 (!%p238_p2), 2, %v340_v5  ;;  %s2682_s16 = smov (!%p238_p2), 110   ;;  %s2683_s17 = smov (!%p238_p2), 109   ;;  %vm597_vm6 = vcmask (!%p238_p2), 891904  }
   0xa   : > { %s2684_s18 = smov (!%p238_p2), 108   ;;  %s2685_s19 = smov (!%p238_p2), 92   ;;  %vm648_vm7 = vcmask (!%p238_p2), 883712   ;;  %vm699_vm8 = vcmask (!%p238_p2), 752640   ;;  %vm750_vm9 = vcmask (!%p238_p2), 744448   ;;  %vm801_vm10 = vcmask (!%p238_p2), 736256  }
   0xb   : > { %323 = vperm.xlu1 (!%p238_p2), %2340, %v2749_v3   ;;  %309 = vperm.xlu0 (!%p238_p2), %2339, %v2749_v3   ;;  %v2766_v23 = vrot.slane (!%p238_p2), %v279_v13, %v345_v10  ;;  %v2768_v26 = vrot.slane (!%p238_p2), %v279_v13, %v341_v14  ;;  %v2773_v41 = vrot.slane (!%p238_p2), %v279_v13, %v349_v27  ;;  %s2686_s20 = smov (!%p238_p2), 91   ;;  %s2687_s23 = smov (!%p238_p2), 90   ;;  %v2688_v10 = vmov (!%p238_p2), 2  }
   0xd   : > { %s3170_s25 = smov (!%p269_p3, %s2124_s25), 1 }
   0xe   : > { %s2313_s30 = smul.u32 48, %s3170_s25 }
   0xf   : > { %2501 = vset.pattern.permute.xlu0 %v2688_v10  ;;  %2502 = vset.pattern.permute.xlu1 %v2688_v10  ;;  %s2314_s27 = smul.u32 24, %s3170_s25 }
  0x10   : > { %s273_s10 = scalar_lea.vmem %s3161_s0, %s2313_s30 }
  0x11   : > { %v280_v7 = vld [vmem:[%s273_s10] sm:$0xff]  ;;  %v281_v8 = vld [vmem:[%s273_s10 + $0x8] sm:$0xff]  ;;  %v282_v9 = vld [vmem:[%s273_s10 + $0x10] sm:$0xff]  ;;  %s278_s30 = scalar_lea.vmem %s3168_s7, %s2314_s27 }
  0x12   : > { %v283_v18 = vld [vmem:[%s273_s10 + $0x18] sm:$0xff]  ;;  %v284_v19 = vld [vmem:[%s273_s10 + $0x20] sm:$0xff]  ;;  %v285_v20 = vld [vmem:[%s273_s10 + $0x28] sm:$0xff] }
  0x86   : > { %v320_v11 = vpop.permute.xlu1 %319  ;;  %v305_v12 = vpop.permute.xlu0 %304 }
  0x87   : > { %v312_v15 = vmul.f32 %v305_v12, %v280_v7  ;;  %v313_v16 = vmul.f32 %v305_v12, %v281_v8  ;;  %v314_v17 = vmul.f32 %v305_v12, %v282_v9  ;;  %v295_v9 = vld [vmem:[%s3164_s3 + $0x8] sm:$0xff] }
  0x88   : > { %2131 = vmatprep.mubr.msk.f32.mxu0 %vm882_vm2, %v295_v9  ;;  %2133 = vmatprep.mubr.msk.f32.mxu1 %vm882_vm2, %v295_v9 }
  0x89   : > { %v326_v21 = vadd.f32 %v320_v11, %v312_v15  ;;  %v327_v22 = vadd.f32 %v320_v11, %v313_v16  ;;  %v328_v24 = vadd.f32 %v320_v11, %v314_v17 }
  0x8a   : > { %v310_v25 = vpop.permute.xlu0 %309  ;;  %v324_v32 = vpop.permute.xlu1 %323 }
  0x8b   : > { %v315_v28 = vmul.f32 %v310_v25, %v283_v18  ;;  %v316_v29 = vmul.f32 %v310_v25, %v284_v19  ;;  %v317_v30 = vmul.f32 %v310_v25, %v285_v20  ;;  %v333_v31 = vmax.f32 %v327_v22, 0.0 }
  0x8c   : > { %v332_v33 = vmax.f32 %v326_v21, 0.0  ;;  %v334_v40 = vmax.f32 %v328_v24, 0.0 }
  0x8d   : > { %v329_v34 = vadd.f32 %v324_v32, %v315_v28  ;;  %v331_v35 = vadd.f32 %v324_v32, %v317_v30  ;;  %v355_v36 = vmul.f32 %v2766_v23, %v333_v31  ;;  %v330_v38 = vadd.f32 %v324_v32, %v316_v29 }
  0x8e   : > { %v354_v39 = vmul.f32 %v2768_v26, %v332_v33  ;;  %v356_v45 = vmul.f32 %v2773_v41, %v334_v40 }
  0x8f   : > { %368 = vrot.lane.b32.xlu1 %v355_v36, %s2679_s13  ;;  %v335_v42 = vmax.f32 %v329_v34, 0.0  ;;  %v337_v44 = vmax.f32 %v331_v35, 0.0  ;;  %v336_v46 = vmax.f32 %v330_v38, 0.0 }
  0x90   : > { %366 = vrot.lane.b32.xlu0 %v354_v39, %s2679_s13 }
  0x91   : > { %v357_v43 = vmul.f32 %v2768_v26, %v335_v42  ;;  %v359_v47 = vmul.f32 %v2773_v41, %v337_v44  ;;  %v358_v48 = vmul.f32 %v2766_v23, %v336_v46 }
  0x93   : > { %372 = vrot.lane.b32.xlu1 %v357_v43, %s2679_s13 }
  0x94   : > { %370 = vrot.lane.b32.xlu0 %v356_v45, %s2679_s13 }
  0x97   : > { %376 = vrot.lane.b32.xlu1 %v359_v47, %s2679_s13 }
  0x98   : > { %374 = vrot.lane.b32.xlu0 %v358_v48, %s2679_s13 }
 0x101   : > { %v369_v49 = vpop.permute.xlu1 %368 }
 0x102   : > { %v367_v50 = vpop.permute.xlu0 %366 }
 0x103   : > { %392 = vst.msk [vmem:[#allocation2] sm:$0xff] %vm391_vm0, %v367_v50  ;;  %v379_v55 = vsel %vm378_vm1, %v367_v50, %v369_v49 }
 0x105   : > { %v373_v51 = vpop.permute.xlu1 %372 }
 0x106   : > { %396 = vst.msk [vmem:[#allocation2 + $0x20] sm:$0xff] %vm391_vm0, %v373_v51  ;;  %v371_v52 = vpop.permute.xlu0 %370 }
 0x107   : > { %395 = vst.msk [vmem:[#allocation2 + $0x18] sm:$0xff] %vm378_vm1, %v371_v52  ;;  %v380_v56 = vsel %vm378_vm1, %v369_v49, %v371_v52 }
 0x108   : > { %v2406_v8 = vpack.i.bf16 %v380_v56, %v379_v55 }
 0x109   : > { %v377_v53 = vpop.permute.xlu1 %376 }
 0x10a   : > { %399 = vst.msk [vmem:[#allocation2 + $0x38] sm:$0xff] %vm378_vm1, %v377_v53  ;;  %v375_v54 = vpop.permute.xlu0 %374  ;;  %v463_v61 = vld [vmem:[#allocation2] sm:$0xff] }
 0x10b   : > { %v381_v57 = vsel %vm378_vm1, %v373_v51, %v375_v54  ;;  %v382_v58 = vsel %vm378_vm1, %v375_v54, %v377_v53 }
 0x10c   : > { %v2171_v59 = vpack.c.bf16 %v381_v57, %v379_v55  ;;  %v2208_v60 = vpack.c.bf16 %v382_v58, %v380_v56  ;;  %v2411_v7 = vpack.i.bf16 %v382_v58, %v381_v57 }
 0x10d   : > { %v467_v62 = vld [vmem:[#allocation2 + $0x20] sm:$0xff] }
 0x10e   : > { %v2346_v63 = vpack.i.bf16 %v467_v62, %v463_v61  ;;  %2172 = vmatprep.subr.bf16.mxu0 %v2171_v59  ;;  %2209 = vmatpush1.bf16.msra.mxu1 %v2208_v60  ;;  %v2173_v1 = vpack.c.bf16 %v467_v62, %v463_v61  ;;  %v415_v2 = vld [vmem:[#allocation2 + $0x18] sm:$0xff] }
 0x10f   : > { %2210 = vmatprep.subr.bf16.mxu1 %v2678_v37 }
 0x110   : > { %2347 = vrot.lane.b32.xlu1 %v2346_v63, %s2680_s14  ;;  %2342 = vrot.lane.b32.xlu0 %v2346_v63, %s2681_s15 }
 0x111   : > { %v419_v4 = vld [vmem:[#allocation2 + $0x38] sm:$0xff]  ;;  %2174 = vmatpush1.bf16.msra.mxu0 %v2173_v1 }
 0x112   : > { %v2351_v5 = vpack.i.bf16 %v419_v4, %v415_v2 }
 0x114   : > { %2357 = vrot.lane.b32.xlu1 %v2346_v63, %s2682_s16  ;;  %2352 = vrot.lane.b32.xlu0 %v2351_v5, %s2681_s15 }
 0x118   : > { %2367 = vrot.lane.b32.xlu1 %v2346_v63, %s2683_s17  ;;  %2362 = vrot.lane.b32.xlu0 %v2351_v5, %s2680_s14 }
 0x11c   : > { %2377 = vrot.lane.b32.xlu1 %v2346_v63, %s2684_s18  ;;  %2372 = vrot.lane.b32.xlu0 %v2351_v5, %s2682_s16 }
 0x120   : > { %2387 = vrot.lane.b32.xlu1 %v2346_v63, %s2685_s19  ;;  %2382 = vrot.lane.b32.xlu0 %v2351_v5, %s2683_s17 }
 0x124   : > { %2397 = vrot.lane.b32.xlu1 %v2346_v63, %s2686_s20  ;;  %2392 = vrot.lane.b32.xlu0 %v2351_v5, %s2684_s18 }
 0x128   : > { %2402 = vrot.lane.b32.xlu0 %v2351_v5, %s2685_s19  ;;  %2412 = vrot.lane.b32.xlu1 %v2411_v7, %s2681_s15 }
 0x12c   : > { %2407 = vrot.lane.b32.xlu0 %v2406_v8, %s2681_s15  ;;  %2417 = vrot.lane.b32.xlu1 %v2406_v8, %s2680_s14 }
 0x130   : > { %2422 = vrot.lane.b32.xlu0 %v2411_v7, %s2680_s14  ;;  %2427 = vrot.lane.b32.xlu1 %v2406_v8, %s2682_s16 }
 0x134   : > { %2432 = vrot.lane.b32.xlu0 %v2411_v7, %s2682_s16  ;;  %2437 = vrot.lane.b32.xlu1 %v2406_v8, %s2683_s17 }
 0x138   : > { %2442 = vrot.lane.b32.xlu0 %v2411_v7, %s2683_s17  ;;  %2447 = vrot.lane.b32.xlu1 %v2406_v8, %s2684_s18 }
 0x13c   : > { %2452 = vrot.lane.b32.xlu0 %v2411_v7, %s2684_s18  ;;  %2457 = vrot.lane.b32.xlu1 %v2406_v8, %s2685_s19 }
 0x140   : > { %2462 = vrot.lane.b32.xlu0 %v2411_v7, %s2685_s19  ;;  %2467 = vrot.lane.b32.xlu1 %v2406_v8, %s2686_s20 }
 0x144   : > { %2472 = vrot.lane.b32.xlu0 %v2411_v7, %s2686_s20  ;;  %2477 = vrot.lane.b32.xlu1 %v2406_v8, %s2687_s23 }
 0x148   : > { %2487 = vrot.lane.b32.xlu0 %v2411_v7, %s2687_s23  ;;  %2482 = vrot.lane.b32.xlu1 %v2346_v63, %s2687_s23 }
 0x14c   : > { %2492 = vrot.lane.b32.xlu0 %v2351_v5, %s2686_s20  ;;  %2497 = vrot.lane.b32.xlu1 %v2351_v5, %s2687_s23 }
 0x150   : > { %875 = vperm.xlu0 %2501, %v2742_v0   ;;  %879 = vperm.xlu1 %2502, %v2749_v3  }
 0x182   : > { %v2833_v11 = vpop.permute.xlu1 %2347  ;;  %v2343_v12 = vpop.permute.xlu0 %2342 }
 0x183   : > { %v2350_v29 = vunpack.i.h.bf16 %v2833_v11  ;;  %v2349_v30 = vunpack.i.l.bf16 %v2833_v11  ;;  %v2345_v31 = vunpack.i.h.bf16 %v2343_v12  ;;  %v2344_v32 = vunpack.i.l.bf16 %v2343_v12 }
 0x186   : > { %v2835_v13 = vpop.permute.xlu1 %2357  ;;  %v2353_v14 = vpop.permute.xlu0 %2352 }
 0x187   : > { %v2360_v33 = vunpack.i.h.bf16 %v2835_v13  ;;  %v2359_v34 = vunpack.i.l.bf16 %v2835_v13  ;;  %v2355_v35 = vunpack.i.h.bf16 %v2353_v14  ;;  %v2354_v36 = vunpack.i.l.bf16 %v2353_v14 }
 0x18a   : > { %v2837_v15 = vpop.permute.xlu1 %2367  ;;  %v2363_v16 = vpop.permute.xlu0 %2362 }
 0x18b   : > { %v2370_v45 = vunpack.i.h.bf16 %v2837_v15  ;;  %v2369_v46 = vunpack.i.l.bf16 %v2837_v15  ;;  %v2364_v53 = vunpack.i.l.bf16 %v2363_v16  ;;  %v2365_v59 = vunpack.i.h.bf16 %v2363_v16 }
 0x18e   : > { %v2839_v17 = vpop.permute.xlu1 %2377  ;;  %v2841_v18 = vpop.permute.xlu0 %2372 }
 0x18f   : > { %v2375_v5 = vunpack.i.h.bf16 %v2841_v18  ;;  %v2374_v10 = vunpack.i.l.bf16 %v2841_v18  ;;  %v2379_v18 = vunpack.i.l.bf16 %v2839_v17 }
 0x192   : > { %v2843_v19 = vpop.permute.xlu1 %2387  ;;  %v2845_v20 = vpop.permute.xlu0 %2382 }
 0x196   : > { %v2847_v21 = vpop.permute.xlu1 %2397  ;;  %v2849_v22 = vpop.permute.xlu0 %2392 }
 0x19a   : > { %v2413_v24 = vpop.permute.xlu1 %2412  ;;  %v2851_v25 = vpop.permute.xlu0 %2402 }
 0x19b   : > { %v2415_v27 = vunpack.i.h.bf16 %v2413_v24  ;;  %v2414_v28 = vunpack.i.l.bf16 %v2413_v24 }
 0x19d   : > { %v449_v47 = vsel %vm444_vm3, %v2414_v28, %v2415_v27  ;;  %v450_v48 = vsel %vm444_vm3, %v2415_v27, %v2355_v35  ;;  %v448_v52 = vsel %vm444_vm3, %v2345_v31, %v2414_v28 }
 0x19e   : > { %v2418_v38 = vpop.permute.xlu1 %2417  ;;  %v2408_v39 = vpop.permute.xlu0 %2407 }
 0x19f   : > { %v2420_v40 = vunpack.i.h.bf16 %v2418_v38  ;;  %v2419_v42 = vunpack.i.l.bf16 %v2418_v38  ;;  %v2410_v43 = vunpack.i.h.bf16 %v2408_v39  ;;  %v2409_v44 = vunpack.i.l.bf16 %v2408_v39 }
 0x1a1   : > { %v446_v49 = vsel %vm444_vm3, %v2409_v44, %v2410_v43  ;;  %v447_v50 = vsel %vm444_vm3, %v2410_v43, %v2354_v36  ;;  %v445_v51 = vsel %vm444_vm3, %v2344_v32, %v2409_v44  ;;  %v497_v62 = vsel %vm495_vm4, %v2419_v42, %v2420_v40 }
 0x1a2   : > { %v2428_v54 = vpop.permute.xlu1 %2427  ;;  %v2423_v55 = vpop.permute.xlu0 %2422  ;;  %v2175_v56 = vpack.c.bf16 %v449_v47, %v446_v49  ;;  %v2211_v57 = vpack.c.bf16 %v450_v48, %v447_v50  ;;  %v2177_v58 = vpack.c.bf16 %v448_v52, %v445_v51  ;;  %v498_v2 = vsel %vm495_vm4, %v2420_v40, %v2364_v53 }
 0x1a3   : > { %v2425_v60 = vunpack.i.h.bf16 %v2423_v55  ;;  %v2424_v61 = vunpack.i.l.bf16 %v2423_v55  ;;  %v2430_v63 = vunpack.i.h.bf16 %v2428_v54  ;;  %v2429_v1 = vunpack.i.l.bf16 %v2428_v54 }
 0x1a4   : > { %2176 = vmatprep.subr.bf16.mxu0 %v2175_v56  ;;  %2212 = vmatpush1.bf16.msra.mxu1 %v2211_v57  ;;  %v496_v4 = vsel %vm495_vm4, %v2349_v30, %v2419_v42  ;;  %v2380_v32 = vunpack.i.h.bf16 %v2839_v17  ;;  %v2384_v42 = vunpack.i.l.bf16 %v2845_v20  ;;  %v2385_v17 = vunpack.i.h.bf16 %v2845_v20 }
 0x1a5   : > { %2178 = vmatpush1.bf16.msra.mxu0 %v2177_v58  ;;  %2213 = vmatprep.subr.bf16.mxu1 %v2678_v37  ;;  %v500_v7 = vsel %vm495_vm4, %v2424_v61, %v2425_v60  ;;  %v501_v8 = vsel %vm495_vm4, %v2425_v60, %v2365_v59  ;;  %v499_v9 = vsel %vm495_vm4, %v2350_v29, %v2424_v61  ;;  %v2395_v54 = vunpack.i.h.bf16 %v2849_v22 }
 0x1a6   : > { %v2438_v11 = vpop.permute.xlu1 %2437  ;;  %v2433_v12 = vpop.permute.xlu0 %2432  ;;  %v2179_v14 = vpack.c.bf16 %v500_v7, %v497_v62  ;;  %v2214_v16 = vpack.c.bf16 %v501_v8, %v498_v2  ;;  %v2181_v24 = vpack.c.bf16 %v499_v9, %v496_v4  ;;  %v548_v35 = vsel %vm546_vm5, %v2429_v1, %v2430_v63 }
 0x1a7   : > { %v2440_v27 = vunpack.i.h.bf16 %v2438_v11  ;;  %v2439_v28 = vunpack.i.l.bf16 %v2438_v11  ;;  %v2435_v30 = vunpack.i.h.bf16 %v2433_v12  ;;  %v2434_v31 = vunpack.i.l.bf16 %v2433_v12 }
 0x1a8   : > { %2180 = vmatprep.subr.bf16.mxu0 %v2179_v14  ;;  %2215 = vmatpush1.bf16.msra.mxu1 %v2214_v16  ;;  %v549_v29 = vsel %vm546_vm5, %v2430_v63, %v2374_v10  ;;  %v547_v36 = vsel %vm546_vm5, %v2359_v34, %v2429_v1  ;;  %v2394_v57 = vunpack.i.l.bf16 %v2849_v22  ;;  %v2390_v4 = vunpack.i.h.bf16 %v2843_v19 }
 0x1a9   : > { %2182 = vmatpush1.bf16.msra.mxu0 %v2181_v24  ;;  %2216 = vmatprep.subr.bf16.mxu1 %v2678_v37  ;;  %v551_v38 = vsel %vm546_vm5, %v2434_v31, %v2435_v30  ;;  %v552_v39 = vsel %vm546_vm5, %v2435_v30, %v2375_v5  ;;  %v550_v40 = vsel %vm546_vm5, %v2360_v33, %v2434_v31  ;;  %v2389_v22 = vunpack.i.l.bf16 %v2843_v19 }
 0x1aa   : > { %v2448_v43 = vpop.permute.xlu1 %2447  ;;  %v2443_v44 = vpop.permute.xlu0 %2442  ;;  %v2183_v47 = vpack.c.bf16 %v551_v38, %v548_v35  ;;  %v2217_v34 = vpack.c.bf16 %v552_v39, %v549_v29  ;;  %v2185_v48 = vpack.c.bf16 %v550_v40, %v547_v36  ;;  %v599_v51 = vsel %vm597_vm6, %v2439_v28, %v2440_v27 }
 0x1ab   : > { %v2445_v49 = vunpack.i.h.bf16 %v2443_v44  ;;  %v2444_v50 = vunpack.i.l.bf16 %v2443_v44  ;;  %v2450_v52 = vunpack.i.h.bf16 %v2448_v43  ;;  %v2449_v53 = vunpack.i.l.bf16 %v2448_v43 }
 0x1ac   : > { %2184 = vmatprep.subr.bf16.mxu0 %v2183_v47  ;;  %2218 = vmatpush1.bf16.msra.mxu1 %v2217_v34  ;;  %v600_v13 = vsel %vm597_vm6, %v2440_v27, %v2384_v42  ;;  %v598_v33 = vsel %vm597_vm6, %v2369_v46, %v2439_v28  ;;  %v2404_v10 = vunpack.i.l.bf16 %v2851_v25  ;;  %v2405_v27 = vunpack.i.h.bf16 %v2851_v25 }
 0x1ad   : > { %2186 = vmatpush1.bf16.msra.mxu0 %v2185_v48  ;;  %2219 = vmatprep.subr.bf16.mxu1 %v2678_v37  ;;  %v602_v20 = vsel %vm597_vm6, %v2444_v50, %v2445_v49  ;;  %v603_v55 = vsel %vm597_vm6, %v2445_v49, %v2385_v17  ;;  %v601_v56 = vsel %vm597_vm6, %v2370_v45, %v2444_v50  ;;  %v2400_v44 = vunpack.i.h.bf16 %v2847_v21 }
 0x1ae   : > { %v2458_v58 = vpop.permute.xlu1 %2457  ;;  %v2453_v59 = vpop.permute.xlu0 %2452  ;;  %v2187_v60 = vpack.c.bf16 %v602_v20, %v599_v51  ;;  %v2220_v61 = vpack.c.bf16 %v603_v55, %v600_v13  ;;  %v2189_v46 = vpack.c.bf16 %v601_v56, %v598_v33  ;;  %v650_v5 = vsel %vm648_vm7, %v2449_v53, %v2450_v52 }
 0x1af   : > { %v2460_v62 = vunpack.i.h.bf16 %v2458_v58  ;;  %v2459_v63 = vunpack.i.l.bf16 %v2458_v58  ;;  %v2455_v1 = vunpack.i.h.bf16 %v2453_v59  ;;  %v2454_v2 = vunpack.i.l.bf16 %v2453_v59 }
 0x1b0   : > { %2188 = vmatprep.subr.bf16.mxu0 %v2187_v60  ;;  %2221 = vmatpush1.bf16.msra.mxu1 %v2220_v61  ;;  %v651_v15 = vsel %vm648_vm7, %v2450_v52, %v2394_v57  ;;  %v649_v45 = vsel %vm648_vm7, %v2379_v18, %v2449_v53  ;;  %v2399_v47 = vunpack.i.l.bf16 %v2847_v21 }
 0x1b1   : > { %2190 = vmatpush1.bf16.msra.mxu0 %v2189_v46  ;;  %2222 = vmatprep.subr.bf16.mxu1 %v2678_v37  ;;  %v653_v7 = vsel %vm648_vm7, %v2454_v2, %v2455_v1  ;;  %v654_v8 = vsel %vm648_vm7, %v2455_v1, %v2395_v54  ;;  %v652_v9 = vsel %vm648_vm7, %v2380_v32, %v2454_v2 }
 0x1b2   : > { %v2910_v11 = vpop.permute.xlu1 %2467  ;;  %v2463_v12 = vpop.permute.xlu0 %2462  ;;  %v2191_v14 = vpack.c.bf16 %v653_v7, %v650_v5  ;;  %v2223_v16 = vpack.c.bf16 %v654_v8, %v651_v15  ;;  %v2193_v24 = vpack.c.bf16 %v652_v9, %v649_v45  ;;  %v701_v30 = vsel %vm699_vm8, %v2459_v63, %v2460_v62  ;;  %v294_v45 = vld [vmem:[%s3164_s3] sm:$0xff]  ;;  %v297_v9 = vld [vmem:[%s3164_s3 + $0x18] sm:$0xff] }
 0x1b3   : > { %v2465_v19 = vunpack.i.h.bf16 %v2463_v12  ;;  %v2464_v28 = vunpack.i.l.bf16 %v2463_v12  ;;  %v2470_v31 = vunpack.i.h.bf16 %v2910_v11  ;;  %v2469_v35 = vunpack.i.l.bf16 %v2910_v11  ;;  %v296_v12 = vld [vmem:[%s3164_s3 + $0x10] sm:$0xff] }
 0x1b4   : > { %2192 = vmatprep.subr.bf16.mxu0 %v2191_v14  ;;  %2224 = vmatpush1.bf16.msra.mxu1 %v2223_v16  ;;  %v702_v32 = vsel %vm699_vm8, %v2460_v62, %v2404_v10  ;;  %v700_v29 = vsel %vm699_vm8, %v2389_v22, %v2459_v63  ;;  %v298_v16 = vld [vmem:[%s3165_s4] sm:$0xff] }
 0x1b5   : > { %2194 = vmatpush1.bf16.msra.mxu0 %v2193_v24  ;;  %2225 = vmatprep.subr.bf16.mxu1 %v2678_v37  ;;  %v704_v36 = vsel %vm699_vm8, %v2464_v28, %v2465_v19  ;;  %v705_v25 = vsel %vm699_vm8, %v2465_v19, %v2405_v27  ;;  %v703_v18 = vsel %vm699_vm8, %v2390_v4, %v2464_v28  ;;  %v2689_v24 = vmov 4  }
 0x1b6   : > { %v2478_v38 = vpop.permute.xlu1 %2477  ;;  %v2473_v39 = vpop.permute.xlu0 %2472  ;;  %v2195_v40 = vpack.c.bf16 %v704_v36, %v701_v30  ;;  %v2226_v42 = vpack.c.bf16 %v705_v25, %v702_v32  ;;  %v2197_v43 = vpack.c.bf16 %v703_v18, %v700_v29  ;;  %v752_v49 = vsel %vm750_vm9, %v2469_v35, %v2470_v31  ;;  %2503 = vset.pattern.permute.xlu1 %v2689_v24 }
 0x1b7   : > { %v2475_v34 = vunpack.i.h.bf16 %v2473_v39  ;;  %v2474_v48 = vunpack.i.l.bf16 %v2473_v39  ;;  %v2480_v17 = vunpack.i.h.bf16 %v2478_v38  ;;  %v2479_v50 = vunpack.i.l.bf16 %v2478_v38  ;;  %2504 = vset.pattern.permute.xlu0 %v2689_v24  ;;  %1057 = vperm.xlu1 %2503, %v2742_v0  }
 0x1b8   : > { %2196 = vmatprep.subr.bf16.mxu0 %v2195_v40  ;;  %2227 = vmatpush1.bf16.msra.mxu1 %v2226_v42  ;;  %v751_v52 = vsel %vm750_vm9, %v2399_v47, %v2469_v35 }
 0x1b9   : > { %2198 = vmatpush1.bf16.msra.mxu0 %v2197_v43  ;;  %v755_v51 = vsel %vm750_vm9, %v2474_v48, %v2475_v34  ;;  %v754_v53 = vsel %vm750_vm9, %v2400_v44, %v2474_v48  ;;  %2228 = vmatprep.subr.bf16.mxu1 %v2678_v37  ;;  %v803_v58 = vsel %vm801_vm10, %v2479_v50, %v2480_v17 }
 0x1ba   : > { %v2483_v13 = vpop.permute.xlu1 %2482  ;;  %v2488_v33 = vpop.permute.xlu0 %2487  ;;  %v2199_v21 = vpack.c.bf16 %v755_v51, %v752_v49  ;;  %v2201_v54 = vpack.c.bf16 %v754_v53, %v751_v52  ;;  %1062 = vperm.xlu0 %2504, %v2749_v3   ;;  %v299_v53 = vld [vmem:[%s3165_s4 + $0x8] sm:$0xff] }
 0x1bb   : > { %v2485_v20 = vunpack.i.h.bf16 %v2483_v13  ;;  %v2484_v55 = vunpack.i.l.bf16 %v2483_v13  ;;  %v2490_v56 = vunpack.i.h.bf16 %v2488_v33  ;;  %v2489_v57 = vunpack.i.l.bf16 %v2488_v33 }
 0x1bc   : > { %2200 = vmatprep.subr.bf16.mxu0 %v2199_v21 }
 0x1bd   : > { %2202 = vmatpush1.bf16.msra.mxu0 %v2201_v54  ;;  %v806_v59 = vsel %vm801_vm10, %v2489_v57, %v2490_v56  ;;  %v802_v60 = vsel %vm801_vm10, %v2484_v55, %v2479_v50  ;;  %v805_v61 = vsel %vm801_vm10, %v2485_v20, %v2489_v57 }
 0x1be   : > { %v2498_v46 = vpop.permute.xlu1 %2497  ;;  %v2493_v62 = vpop.permute.xlu0 %2492  ;;  %v2203_v63 = vpack.c.bf16 %v806_v59, %v803_v58  ;;  %v2205_v1 = vpack.c.bf16 %v805_v61, %v802_v60 }
 0x1bf   : > { %v2500_v2 = vunpack.i.h.bf16 %v2498_v46  ;;  %v2499_v4 = vunpack.i.l.bf16 %v2498_v46  ;;  %v2495_v5 = vunpack.i.h.bf16 %v2493_v62  ;;  %v2494_v15 = vunpack.i.l.bf16 %v2493_v62 }
 0x1c0   : > { %2204 = vmatprep.subr.bf16.mxu0 %v2203_v63 }
 0x1c1   : > { %2206 = vmatpush1.bf16.msra.mxu0 %v2205_v1  ;;  %v753_v22 = vsel %vm750_vm9, %v2470_v31, %v2494_v15  ;;  %v756_v7 = vsel %vm750_vm9, %v2475_v34, %v2495_v5  ;;  %v804_v10 = vsel %vm801_vm10, %v2480_v17, %v2499_v4  ;;  %v807_v11 = vsel %vm801_vm10, %v2490_v56, %v2500_v2 }
 0x1c2   : > { %v2229_v8 = vpack.c.bf16 %v756_v7, %v753_v22  ;;  %v2232_v14 = vpack.c.bf16 %v807_v11, %v804_v10 }
 0x1c4   : > { %954 = vmatmul.mubr.f32.vlgmr.msra.gmra.mrb[0].mxu0 %v294_v45  ;;  %2230 = vmatpush1.bf16.msra.mxu1 %v2229_v8 }
 0x1c5   : > { %2132 = vmatprep.mubr.msk.f32.mxu0 %vm882_vm2, %v297_v9  ;;  %2231 = vmatprep.subr.bf16.mxu1 %v2678_v37 }
 0x1c8   : > { %960 = vmatmul.mubr.f32.gmra.mrb[2].mxu0 %v296_v12  ;;  %2233 = vmatpush1.bf16.msra.mxu1 %v2232_v14 }
 0x1c9   : > { %1135 = vmatprep.mubr.f32.mxu0 %v2677_v6 }
 0x1cb   : > { %1031 = vmatmul.mubr.f32.vlgmr.msra.gmra.mrb[0].mxu1 %v294_v45 }
 0x1cc   : > { %2134 = vmatprep.mubr.msk.f32.mxu1 %vm882_vm2, %v297_v9 }
 0x1cf   : > { %1036 = vmatmul.mubr.f32.gmra.mrb[2].mxu1 %v296_v12  ;;  %v876_v27 = vpop.permute.xlu0 %875  ;;  %v880_v30 = vpop.permute.xlu1 %879 }
 0x1d0   : > { %2161 = vmatprep.mubr.msk.f32.mxu1 %vm882_vm2, %v298_v16 }
 0x236   : > { %v1058_v13 = vpop.permute.xlu1 %1057 }
 0x239   : > { %v1063_v55 = vpop.permute.xlu0 %1062 }
 0x297   : > { %v955_v19 = vpop.f32.mrb[0].mxu0 }
 0x298   : > { %v957_v28 = vpop.f32.mrb[1].mxu0  ;;  %v956_v31 = vadd.f32 %v955_v19, %v876_v27 }
 0x299   : > { %v958_v35 = vadd.f32 %v957_v28, %v876_v27 }
 0x29a   : > { %v1041_v18 = vmax.f32 %v956_v31, 0.0 }
 0x29b   : > { %v961_v32 = vpop.f32.mrb[2].mxu0  ;;  %v1042_v40 = vmax.f32 %v958_v35, 0.0 }
 0x29c   : > { %v962_v29 = vadd.f32 %v961_v32, %v880_v30  ;;  %v963_v36 = vpop.f32.mrb[3].mxu0 }
 0x29d   : > { %v964_v25 = vadd.f32 %v963_v36, %v880_v30 }
 0x29e   : > { %v1044_v38 = vmax.f32 %v962_v29, 0.0  ;;  %v1032_v39 = vpop.f32.mrb[0].mxu1 }
 0x29f   : > { %v1045_v42 = vmax.f32 %v964_v25, 0.0  ;;  %v1034_v43 = vpop.f32.mrb[1].mxu1  ;;  %v1033_v34 = vadd.f32 %v1032_v39, %v876_v27 }
 0x2a0   : > { %v2236_v44 = vpack.c.bf16 %v1044_v38, %v1041_v18 }
 0x2a1   : > { %v2234_v47 = vpack.c.bf16 %v1045_v42, %v1042_v40  ;;  %v1043_v50 = vmax.f32 %v1033_v34, 0.0  ;;  %v1048_v40 = vld [vmem:[%s3166_s5 + $0x8] sm:$0xff]  ;;  %v2690_v42 = vmov 5  }
 0x2a2   : > { %v1037_v48 = vpop.f32.mrb[2].mxu1  ;;  %2665 = vset.pattern.permute.xlu0 %v2690_v42  ;;  %2666 = vset.pattern.permute.xlu1 %v2690_v42 }
 0x2a3   : > { %v1038_v17 = vadd.f32 %v1037_v48, %v880_v30  ;;  %v1039_v49 = vpop.f32.mrb[3].mxu1  ;;  %2235 = vmatprep.subr.bf16.mxu0 %v2234_v47 }
 0x2a4   : > { %2237 = vmatpush1.bf16.msra.mxu0 %v2236_v44 }
 0x2a5   : > { %v1046_v51 = vmax.f32 %v1038_v17, 0.0 }
 0x2a7   : > { %v2238_v52 = vpack.c.bf16 %v1046_v51, %v1043_v50  ;;  %2135 = vmatmul.mubr.msk.f32.vlgmr.msra.gmra.mrb[4].mxu0 %vm882_vm2, %v298_v16 }
 0x2a8   : > { %1141 = vmatprep.mubr.f32.mxu0 %v2677_v6 }
 0x2a9   : > { %2239 = vmatprep.subr.bf16.mxu1 %v2238_v52 }
 0x2aa   : > { %2241 = vmatpush3.bf16.msra.mxu1 %v2238_v52 }
 0x2ab   : > { %2136 = vmatmul.mubr.msk.f32.gmra.mrb[6].mxu0 %vm882_vm2, %v299_v53  ;;  %2278 = vmatprep.subr.bf16.mxu1 %v2678_v37 }
 0x2ac   : > { %2139 = vmatprep.mubr.msk.f32.mxu0 %vm882_vm2, %v1048_v40 }
 0x2ad   : > { %2162 = vmatmul.mubr.msk.f32.vlgmr.msra.gmra.mrb[4].mxu1 %vm882_vm2, %v299_v53 }
 0x2ae   : > { %2141 = vmatprep.mubr.msk.f32.mxu1 %vm882_vm2, %v1048_v40 }
 0x37a   : > { %v1137_v33 = vpop.f32.mrb[4].mxu0 }
 0x37b   : > { %v1138_v21 = vadd.f32 %v1137_v33, %v1058_v13  ;;  %v1139_v54 = vpop.f32.mrb[5].mxu0 }
 0x37c   : > { %v1140_v20 = vadd.f32 %v1139_v54, %v1058_v13 }
 0x37d   : > { %v1223_v56 = vmax.f32 %v1138_v21, 0.0 }
 0x37e   : > { %v1143_v57 = vpop.f32.mrb[6].mxu0  ;;  %v1224_v59 = vmax.f32 %v1140_v20, 0.0 }
 0x37f   : > { %v1229_v58 = vmul.f32 %v1223_v56, %v2768_v26  ;;  %v1144_v60 = vadd.f32 %v1143_v57, %v1063_v55  ;;  %v1145_v61 = vpop.f32.mrb[7].mxu0 }
 0x380   : > { %v2163_v46 = vpop.f32.mrb[4].mxu1  ;;  %v1146_v2 = vadd.f32 %v1145_v61, %v1063_v55  ;;  %v1230_v4 = vmul.f32 %v1224_v59, %v2766_v23 }
 0x381   : > { %v1226_v62 = vmax.f32 %v1144_v60, 0.0  ;;  %v1214_v63 = vpop.f32.mrb[5].mxu1  ;;  %1241 = vrot.lane.b32.xlu1 %v1229_v58, %s2679_s13  ;;  %v1220_v5 = vadd.f32 %v2163_v46, %v1063_v55 }
 0x382   : > { %v1215_v1 = vadd.f32 %v1214_v63, %v1058_v13  ;;  %v1227_v7 = vmax.f32 %v1146_v2, 0.0 }
 0x383   : > { %v1232_v45 = vmul.f32 %v1226_v62, %v2768_v26  ;;  %v1228_v8 = vmax.f32 %v1220_v5, 0.0 }
 0x384   : > { %v1225_v15 = vmax.f32 %v1215_v1, 0.0  ;;  %v1233_v9 = vmul.f32 %v1227_v7, %v2766_v23 }
 0x385   : > { %1243 = vrot.lane.b32.xlu1 %v1230_v4, %s2679_s13  ;;  %v1234_v10 = vmul.f32 %v1228_v8, %v2773_v41 }
 0x386   : > { %v1231_v22 = vmul.f32 %v1225_v15, %v2773_v41 }
 0x388   : > { %1245 = vrot.lane.b32.xlu0 %v1231_v22, %s2679_s13 }
 0x389   : > { %1247 = vrot.lane.b32.xlu1 %v1232_v45, %s2679_s13 }
 0x38c   : > { %1249 = vrot.lane.b32.xlu0 %v1233_v9, %s2679_s13 }
 0x38d   : > { %1251 = vrot.lane.b32.xlu1 %v1234_v10, %s2679_s13 }
 0x3f3   : > { %v1242_v11 = vpop.permute.xlu1 %1241 }
 0x3f4   : > { %1265 = vst.msk [vmem:[#allocation2] sm:$0xff] %vm391_vm0, %v1242_v11 }
 0x3f7   : > { %v1244_v26 = vpop.permute.xlu1 %1243 }
 0x3f8   : > { %v1253_v12 = vsel %vm378_vm1, %v1242_v11, %v1244_v26 }
 0x3fa   : > { %v1246_v14 = vpop.permute.xlu0 %1245 }
 0x3fb   : > { %v1254_v16 = vsel %vm378_vm1, %v1244_v26, %v1246_v14  ;;  %1268 = vst.msk [vmem:[#allocation2 + $0x18] sm:$0xff] %vm378_vm1, %v1246_v14  ;;  %v1248_v24 = vpop.permute.xlu1 %1247  ;;  %v1285_v35 = vld [vmem:[#allocation2] sm:$0xff] }
 0x3fc   : > { %1269 = vst.msk [vmem:[#allocation2 + $0x20] sm:$0xff] %vm391_vm0, %v1248_v24  ;;  %v2520_v23 = vpack.i.bf16 %v1254_v16, %v1253_v12 }
 0x3fe   : > { %v1250_v41 = vpop.permute.xlu0 %1249  ;;  %2521 = vrot.lane.b32.xlu0 %v2520_v23, %s2681_s15 }
 0x3ff   : > { %v1255_v27 = vsel %vm378_vm1, %v1248_v24, %v1250_v41  ;;  %v1252_v19 = vpop.permute.xlu1 %1251 }
 0x400   : > { %v1256_v28 = vsel %vm378_vm1, %v1250_v41, %v1252_v19  ;;  %1272 = vst.msk [vmem:[#allocation2 + $0x38] sm:$0xff] %vm378_vm1, %v1252_v19  ;;  %v2242_v30 = vpack.c.bf16 %v1255_v27, %v1253_v12 }
 0x401   : > { %v2279_v31 = vpack.c.bf16 %v1256_v28, %v1254_v16  ;;  %v2560_v39 = vpack.i.bf16 %v1256_v28, %v1255_v27 }
 0x402   : > { %2243 = vmatprep.subr.bf16.mxu0 %v2242_v30  ;;  %v1288_v25 = vld [vmem:[#allocation2 + $0x18] sm:$0xff] }
 0x403   : > { %v1289_v32 = vld [vmem:[#allocation2 + $0x20] sm:$0xff]  ;;  %2280 = vmatpush1.bf16.msra.mxu1 %v2279_v31 }
 0x404   : > { %v2540_v29 = vpack.i.bf16 %v1289_v32, %v1285_v35  ;;  %v2244_v36 = vpack.c.bf16 %v1289_v32, %v1285_v35  ;;  %2281 = vmatprep.subr.bf16.mxu1 %v2678_v37 }
 0x406   : > { %2541 = vrot.lane.b32.xlu0 %v2540_v29, %s2681_s15  ;;  %2245 = vmatpush1.bf16.msra.mxu0 %v2244_v36 }
 0x407   : > { %v1292_v18 = vld [vmem:[#allocation2 + $0x38] sm:$0xff] }
 0x408   : > { %v2505_v38 = vpack.i.bf16 %v1292_v18, %v1288_v25 }
 0x40a   : > { %2506 = vrot.lane.b32.xlu1 %v2505_v38, %s2681_s15  ;;  %2546 = vrot.lane.b32.xlu0 %v2540_v29, %s2680_s14 }
 0x40e   : > { %2511 = vrot.lane.b32.xlu1 %v2505_v38, %s2680_s14  ;;  %2551 = vrot.lane.b32.xlu0 %v2540_v29, %s2682_s16 }
 0x412   : > { %2516 = vrot.lane.b32.xlu1 %v2505_v38, %s2682_s16  ;;  %2556 = vrot.lane.b32.xlu0 %v2540_v29, %s2683_s17 }
 0x416   : > { %2526 = vrot.lane.b32.xlu1 %v2520_v23, %s2680_s14  ;;  %2576 = vrot.lane.b32.xlu0 %v2540_v29, %s2684_s18 }
 0x41a   : > { %2531 = vrot.lane.b32.xlu1 %v2520_v23, %s2682_s16  ;;  %2591 = vrot.lane.b32.xlu0 %v2540_v29, %s2685_s19 }
 0x41e   : > { %2536 = vrot.lane.b32.xlu1 %v2520_v23, %s2683_s17  ;;  %2606 = vrot.lane.b32.xlu0 %v2540_v29, %s2686_s20 }
 0x422   : > { %2561 = vrot.lane.b32.xlu1 %v2560_v39, %s2681_s15  ;;  %2621 = vrot.lane.b32.xlu0 %v2560_v39, %s2680_s14 }
 0x426   : > { %2566 = vrot.lane.b32.xlu1 %v2520_v23, %s2684_s18  ;;  %2626 = vrot.lane.b32.xlu0 %v2560_v39, %s2682_s16 }
 0x42a   : > { %2571 = vrot.lane.b32.xlu1 %v2505_v38, %s2683_s17  ;;  %2631 = vrot.lane.b32.xlu0 %v2560_v39, %s2683_s17 }
 0x42e   : > { %2581 = vrot.lane.b32.xlu1 %v2520_v23, %s2685_s19  ;;  %2636 = vrot.lane.b32.xlu0 %v2560_v39, %s2684_s18 }
 0x432   : > { %2586 = vrot.lane.b32.xlu1 %v2505_v38, %s2684_s18  ;;  %2641 = vrot.lane.b32.xlu0 %v2560_v39, %s2685_s19 }
 0x436   : > { %2596 = vrot.lane.b32.xlu1 %v2520_v23, %s2686_s20  ;;  %2646 = vrot.lane.b32.xlu0 %v2560_v39, %s2686_s20 }
 0x43a   : > { %2601 = vrot.lane.b32.xlu1 %v2505_v38, %s2685_s19  ;;  %2651 = vrot.lane.b32.xlu0 %v2560_v39, %s2687_s23 }
 0x43e   : > { %2611 = vrot.lane.b32.xlu1 %v2520_v23, %s2687_s23  ;;  %2656 = vrot.lane.b32.xlu0 %v2540_v29, %s2687_s23 }
 0x442   : > { %2616 = vrot.lane.b32.xlu1 %v2505_v38, %s2686_s20  ;;  %1740 = vperm.xlu0 %2665, %v2742_v0  }
 0x446   : > { %2661 = vrot.lane.b32.xlu1 %v2505_v38, %s2687_s23 }
 0x44a   : > { %1744 = vperm.xlu1 %2666, %v2749_v3  }
 0x470   : > { %v2522_v43 = vpop.permute.xlu0 %2521 }
 0x471   : > { %v2524_v3 = vunpack.i.h.bf16 %v2522_v43  ;;  %v2523_v13 = vunpack.i.l.bf16 %v2522_v43 }
 0x473   : > { %v1318_v55 = vsel %vm444_vm3, %v2523_v13, %v2524_v3 }
 0x478   : > { %v2542_v44 = vpop.permute.xlu0 %2541 }
 0x479   : > { %v2543_v33 = vunpack.i.l.bf16 %v2542_v44  ;;  %v2544_v56 = vunpack.i.h.bf16 %v2542_v44 }
 0x47b   : > { %v1317_v57 = vsel %vm444_vm3, %v2543_v33, %v2523_v13 }
 0x47c   : > { %v2507_v47 = vpop.permute.xlu1 %2506  ;;  %v3024_v34 = vpop.permute.xlu0 %2546 }
 0x47d   : > { %v2508_v20 = vunpack.i.l.bf16 %v2507_v47  ;;  %v2509_v58 = vunpack.i.h.bf16 %v2507_v47  ;;  %v2549_v59 = vunpack.i.h.bf16 %v3024_v34  ;;  %v2548_v46 = vunpack.i.l.bf16 %v3024_v34 }
 0x47f   : > { %v1319_v2 = vsel %vm444_vm3, %v2524_v3, %v2508_v20 }
 0x480   : > { %v2512_v48 = vpop.permute.xlu1 %2511  ;;  %v3026_v17 = vpop.permute.xlu0 %2551 }
 0x481   : > { %v2514_v4 = vunpack.i.h.bf16 %v2512_v48  ;;  %v2513_v5 = vunpack.i.l.bf16 %v2512_v48  ;;  %v2554_v9 = vunpack.i.h.bf16 %v3026_v17  ;;  %v2553_v10 = vunpack.i.l.bf16 %v3026_v17 }
 0x484   : > { %v3028_v49 = vpop.permute.xlu1 %2516  ;;  %v3030_v50 = vpop.permute.xlu0 %2556 }
 0x485   : > { %v2519_v11 = vunpack.i.h.bf16 %v3028_v49  ;;  %v2518_v31 = vunpack.i.l.bf16 %v3028_v49  ;;  %v2559_v34 = vunpack.i.h.bf16 %v3030_v50  ;;  %v2558_v33 = vunpack.i.l.bf16 %v3030_v50 }
 0x488   : > { %v3032_v51 = vpop.permute.xlu1 %2526  ;;  %v3034_v52 = vpop.permute.xlu0 %2576 }
 0x489   : > { %v2529_v45 = vunpack.i.h.bf16 %v3032_v51  ;;  %v2528_v22 = vunpack.i.l.bf16 %v3032_v51 }
 0x48b   : > { %v1369_v35 = vsel %vm495_vm4, %v2529_v45, %v2513_v5  ;;  %v1368_v29 = vsel %vm495_vm4, %v2528_v22, %v2529_v45  ;;  %v1367_v48 = vsel %vm495_vm4, %v2548_v46, %v2528_v22  ;;  %v2579_v5 = vunpack.i.h.bf16 %v3034_v52 }
 0x48c   : > { %v3036_v0 = vpop.permute.xlu1 %2531  ;;  %v3038_v53 = vpop.permute.xlu0 %2591 }
 0x48d   : > { %v2534_v27 = vunpack.i.h.bf16 %v3036_v0  ;;  %v2533_v32 = vunpack.i.l.bf16 %v3036_v0 }
 0x48f   : > { %v1419_v17 = vsel %vm546_vm5, %v2534_v27, %v2518_v31  ;;  %v1418_v13 = vsel %vm546_vm5, %v2533_v32, %v2534_v27  ;;  %v1417_v46 = vsel %vm546_vm5, %v2553_v10, %v2533_v32 }
 0x490   : > { %v3040_v21 = vpop.permute.xlu1 %2536  ;;  %v3042_v54 = vpop.permute.xlu0 %2606 }
 0x491   : > { %v2539_v51 = vunpack.i.h.bf16 %v3040_v21  ;;  %v2538_v0 = vunpack.i.l.bf16 %v3040_v21 }
 0x494   : > { %v2562_v60 = vpop.permute.xlu1 %2561  ;;  %v2622_v61 = vpop.permute.xlu0 %2621 }
 0x495   : > { %v2564_v62 = vunpack.i.h.bf16 %v2562_v60  ;;  %v2563_v63 = vunpack.i.l.bf16 %v2562_v60  ;;  %v2624_v1 = vunpack.i.h.bf16 %v2622_v61  ;;  %v2623_v15 = vunpack.i.l.bf16 %v2622_v61 }
 0x497   : > { %v1322_v7 = vsel %vm444_vm3, %v2564_v62, %v2509_v58  ;;  %v1320_v8 = vsel %vm444_vm3, %v2544_v56, %v2563_v63  ;;  %v1372_v24 = vsel %vm495_vm4, %v2624_v1, %v2514_v4  ;;  %v1321_v23 = vsel %vm444_vm3, %v2563_v63, %v2564_v62 }
 0x498   : > { %v2282_v26 = vpack.c.bf16 %v1322_v7, %v1319_v2  ;;  %v3056_v12 = vpop.permute.xlu1 %2566  ;;  %v2627_v14 = vpop.permute.xlu0 %2626  ;;  %v2248_v16 = vpack.c.bf16 %v1320_v8, %v1317_v57  ;;  %v2246_v19 = vpack.c.bf16 %v1321_v23, %v1318_v55  ;;  %v1371_v30 = vsel %vm495_vm4, %v2623_v15, %v2624_v1 }
 0x499   : > { %v2629_v41 = vunpack.i.h.bf16 %v2627_v14  ;;  %v2628_v28 = vunpack.i.l.bf16 %v2627_v14  ;;  %v2285_v36 = vpack.c.bf16 %v1372_v24, %v1369_v35  ;;  %v1370_v25 = vsel %vm495_vm4, %v2549_v59, %v2623_v15 }
 0x49a   : > { %2283 = vmatpush1.bf16.msra.mxu1 %v2282_v26  ;;  %2247 = vmatprep.subr.bf16.mxu0 %v2246_v19  ;;  %v2250_v39 = vpack.c.bf16 %v1371_v30, %v1368_v29  ;;  %v2252_v3 = vpack.c.bf16 %v1370_v25, %v1367_v48  ;;  %v2569_v62 = vunpack.i.h.bf16 %v3056_v12  ;;  %v2568_v50 = vunpack.i.l.bf16 %v3056_v12 }
 0x49b   : > { %2284 = vmatprep.subr.bf16.mxu1 %v2678_v37  ;;  %v1422_v18 = vsel %vm546_vm5, %v2629_v41, %v2519_v11  ;;  %2249 = vmatpush1.bf16.msra.mxu0 %v2248_v16  ;;  %v1421_v47 = vsel %vm546_vm5, %v2628_v28, %v2629_v41  ;;  %v1420_v55 = vsel %vm546_vm5, %v2554_v9, %v2628_v28  ;;  %v2578_v12 = vunpack.i.l.bf16 %v3034_v52 }
 0x49c   : > { %v2572_v38 = vpop.permute.xlu1 %2571  ;;  %v2632_v40 = vpop.permute.xlu0 %2631  ;;  %2251 = vmatprep.subr.bf16.mxu0 %v2250_v39  ;;  %v2288_v20 = vpack.c.bf16 %v1422_v18, %v1419_v17  ;;  %v2254_v57 = vpack.c.bf16 %v1421_v47, %v1418_v13  ;;  %v2256_v1 = vpack.c.bf16 %v1420_v55, %v1417_v46  ;;  %v1468_v4 = vsel %vm597_vm6, %v2538_v0, %v2539_v51 }
 0x49d   : > { %v2574_v42 = vunpack.i.h.bf16 %v2572_v38  ;;  %v2573_v43 = vunpack.i.l.bf16 %v2572_v38  ;;  %v2634_v44 = vunpack.i.h.bf16 %v2632_v40  ;;  %v2633_v49 = vunpack.i.l.bf16 %v2632_v40 }
 0x49e   : > { %2286 = vmatpush1.bf16.msra.mxu1 %v2285_v36  ;;  %v1467_v15 = vsel %vm597_vm6, %v2558_v33, %v2538_v0  ;;  %v1518_v24 = vsel %vm648_vm7, %v2568_v50, %v2569_v62  ;;  %v2594_v28 = vunpack.i.h.bf16 %v3038_v53  ;;  %v2593_v38 = vunpack.i.l.bf16 %v3038_v53 }
 0x49f   : > { %2287 = vmatprep.subr.bf16.mxu1 %v2678_v37  ;;  %v1469_v59 = vsel %vm597_vm6, %v2539_v51, %v2573_v43  ;;  %2253 = vmatpush1.bf16.msra.mxu0 %v2252_v3  ;;  %v1472_v60 = vsel %vm597_vm6, %v2634_v44, %v2574_v42  ;;  %v1471_v61 = vsel %vm597_vm6, %v2633_v49, %v2634_v44  ;;  %v2609_v47 = vunpack.i.h.bf16 %v3042_v54 }
 0x4a0   : > { %v3079_v56 = vpop.permute.xlu1 %2581  ;;  %v2637_v58 = vpop.permute.xlu0 %2636  ;;  %2255 = vmatprep.subr.bf16.mxu0 %v2254_v57  ;;  %v1470_v2 = vsel %vm597_vm6, %v2559_v34, %v2633_v49  ;;  %v2291_v45 = vpack.c.bf16 %v1472_v60, %v1469_v59  ;;  %v2258_v7 = vpack.c.bf16 %v1471_v61, %v1468_v4  ;;  %v1517_v39 = vsel %vm648_vm7, %v2578_v12, %v2568_v50 }
 0x4a1   : > { %v2639_v21 = vunpack.i.h.bf16 %v2637_v58  ;;  %v2638_v63 = vunpack.i.l.bf16 %v2637_v58  ;;  %v2260_v14 = vpack.c.bf16 %v1470_v2, %v1467_v15  ;;  %v2584_v23 = vunpack.i.h.bf16 %v3079_v56 }
 0x4a2   : > { %2289 = vmatpush1.bf16.msra.mxu1 %v2288_v20  ;;  %v2583_v41 = vunpack.i.l.bf16 %v3079_v56  ;;  %v2608_v34 = vunpack.i.l.bf16 %v3042_v54 }
 0x4a3   : > { %2290 = vmatprep.subr.bf16.mxu1 %v2678_v37  ;;  %2257 = vmatpush1.bf16.msra.mxu0 %v2256_v1  ;;  %v1521_v26 = vsel %vm648_vm7, %v2638_v63, %v2639_v21  ;;  %v1520_v52 = vsel %vm648_vm7, %v2579_v5, %v2638_v63 }
 0x4a4   : > { %v2587_v22 = vpop.permute.xlu1 %2586  ;;  %v2642_v8 = vpop.permute.xlu0 %2641  ;;  %2259 = vmatprep.subr.bf16.mxu0 %v2258_v7  ;;  %v2262_v35 = vpack.c.bf16 %v1521_v26, %v1518_v24  ;;  %v2264_v42 = vpack.c.bf16 %v1520_v52, %v1517_v39  ;;  %v1568_v44 = vsel %vm699_vm8, %v2583_v41, %v2584_v23  ;;  %v1567_v48 = vsel %vm699_vm8, %v2593_v38, %v2583_v41  ;;  %v1047_v24 = vld [vmem:[%s3166_s5] sm:$0xff] }
 0x4a5   : > { %v2589_v9 = vunpack.i.h.bf16 %v2587_v22  ;;  %v2588_v10 = vunpack.i.l.bf16 %v2587_v22  ;;  %v2644_v11 = vunpack.i.h.bf16 %v2642_v8  ;;  %v2643_v16 = vunpack.i.l.bf16 %v2642_v8 }
 0x4a6   : > { %2292 = vmatpush1.bf16.msra.mxu1 %v2291_v45 }
 0x4a7   : > { %v1522_v27 = vsel %vm648_vm7, %v2639_v21, %v2589_v9  ;;  %v1519_v19 = vsel %vm648_vm7, %v2569_v62, %v2588_v10  ;;  %2293 = vmatprep.subr.bf16.mxu1 %v2678_v37  ;;  %2261 = vmatpush1.bf16.msra.mxu0 %v2260_v14  ;;  %v1571_v18 = vsel %vm699_vm8, %v2643_v16, %v2644_v11 }
 0x4a8   : > { %v2294_v30 = vpack.c.bf16 %v1522_v27, %v1519_v19  ;;  %v3102_v31 = vpop.permute.xlu1 %2596  ;;  %v2647_v32 = vpop.permute.xlu0 %2646  ;;  %2263 = vmatprep.subr.bf16.mxu0 %v2262_v35  ;;  %v1570_v43 = vsel %vm699_vm8, %v2594_v28, %v2643_v16  ;;  %v2266_v53 = vpack.c.bf16 %v1571_v18, %v1568_v44  ;;  %v1049_v28 = vld [vmem:[%s3166_s5 + $0x10] sm:$0xff] }
 0x4a9   : > { %v2599_v29 = vunpack.i.h.bf16 %v3102_v31  ;;  %v2598_v36 = vunpack.i.l.bf16 %v3102_v31  ;;  %v2649_v25 = vunpack.i.h.bf16 %v2647_v32  ;;  %v2648_v40 = vunpack.i.l.bf16 %v2647_v32 }
 0x4aa   : > { %2295 = vmatpush1.bf16.msra.mxu1 %v2294_v30  ;;  %v2268_v33 = vpack.c.bf16 %v1570_v43, %v1567_v48 }
 0x4ab   : > { %2296 = vmatprep.subr.bf16.mxu1 %v2678_v37  ;;  %2265 = vmatpush1.bf16.msra.mxu0 %v2264_v42  ;;  %v1618_v3 = vsel %vm750_vm9, %v2598_v36, %v2599_v29  ;;  %v1621_v13 = vsel %vm750_vm9, %v2648_v40, %v2649_v25  ;;  %v1617_v20 = vsel %vm750_vm9, %v2608_v34, %v2598_v36 }
 0x4ac   : > { %v2602_v17 = vpop.permute.xlu1 %2601  ;;  %v2652_v49 = vpop.permute.xlu0 %2651  ;;  %v1620_v55 = vsel %vm750_vm9, %v2609_v47, %v2648_v40  ;;  %2267 = vmatprep.subr.bf16.mxu0 %v2266_v53  ;;  %v2270_v21 = vpack.c.bf16 %v1621_v13, %v1618_v3 }
 0x4ad   : > { %v2604_v51 = vunpack.i.h.bf16 %v2602_v17  ;;  %v2603_v0 = vunpack.i.l.bf16 %v2602_v17  ;;  %v2654_v57 = vunpack.i.h.bf16 %v2652_v49  ;;  %v2653_v58 = vunpack.i.l.bf16 %v2652_v49 }
 0x4ae   : > { %v2272_v1 = vpack.c.bf16 %v1620_v55, %v1617_v20 }
 0x4af   : > { %v1572_v54 = vsel %vm699_vm8, %v2644_v11, %v2604_v51  ;;  %v1569_v56 = vsel %vm699_vm8, %v2584_v23, %v2603_v0  ;;  %2269 = vmatpush1.bf16.msra.mxu0 %v2268_v33  ;;  %v1671_v15 = vsel %vm801_vm10, %v2653_v58, %v2654_v57  ;;  %v1050_v23 = vld [vmem:[%s3166_s5 + $0x18] sm:$0xff]  ;;  %v1052_v33 = vld [vmem:[%s3167_s6 + $0x8] sm:$0xff] }
 0x4b0   : > { %v2297_v59 = vpack.c.bf16 %v1572_v54, %v1569_v56  ;;  %v2612_v60 = vpop.permute.xlu1 %2611  ;;  %v2657_v61 = vpop.permute.xlu0 %2656  ;;  %2271 = vmatprep.subr.bf16.mxu0 %v2270_v21 }
 0x4b1   : > { %v2614_v46 = vunpack.i.h.bf16 %v2612_v60  ;;  %v2613_v62 = vunpack.i.l.bf16 %v2612_v60  ;;  %v2659_v50 = vunpack.i.h.bf16 %v2657_v61  ;;  %v2658_v63 = vunpack.i.l.bf16 %v2657_v61 }
 0x4b2   : > { %2298 = vmatpush1.bf16.msra.mxu1 %v2297_v59 }
 0x4b3   : > { %v1667_v2 = vsel %vm801_vm10, %v2658_v63, %v2613_v62  ;;  %v1670_v4 = vsel %vm801_vm10, %v2659_v50, %v2653_v58  ;;  %v1668_v5 = vsel %vm801_vm10, %v2613_v62, %v2614_v46  ;;  %2299 = vmatprep.subr.bf16.mxu1 %v2678_v37  ;;  %2273 = vmatpush1.bf16.msra.mxu0 %v2272_v1 }
 0x4b4   : > { %v2617_v45 = vpop.permute.xlu1 %2616  ;;  %v2274_v22 = vpack.c.bf16 %v1671_v15, %v1668_v5  ;;  %v2276_v7 = vpack.c.bf16 %v1670_v4, %v1667_v2 }
 0x4b5   : > { %v2619_v8 = vunpack.i.h.bf16 %v2617_v45  ;;  %v2618_v9 = vunpack.i.l.bf16 %v2617_v45 }
 0x4b6   : > { %2275 = vmatprep.subr.bf16.mxu0 %v2274_v22 }
 0x4b7   : > { %v1622_v10 = vsel %vm750_vm9, %v2649_v25, %v2619_v8  ;;  %v1619_v11 = vsel %vm750_vm9, %v2599_v29, %v2618_v9  ;;  %2277 = vmatpush1.bf16.msra.mxu0 %v2276_v7 }
 0x4b8   : > { %v2300_v26 = vpack.c.bf16 %v1622_v10, %v1619_v11  ;;  %v2662_v12 = vpop.permute.xlu1 %2661 }
 0x4b9   : > { %v2664_v14 = vunpack.i.h.bf16 %v2662_v12  ;;  %v2663_v16 = vunpack.i.l.bf16 %v2662_v12 }
 0x4ba   : > { %2301 = vmatpush1.bf16.msra.mxu1 %v2300_v26  ;;  %1818 = vmatmul.mubr.f32.vlgmr.msra.gmra.mrb[8].mxu0 %v1047_v24 }
 0x4bb   : > { %v1672_v41 = vsel %vm801_vm10, %v2654_v57, %v2664_v14  ;;  %v1669_v27 = vsel %vm801_vm10, %v2614_v46, %v2663_v16  ;;  %2302 = vmatprep.subr.bf16.mxu1 %v2678_v37  ;;  %2140 = vmatprep.mubr.msk.f32.mxu0 %vm882_vm2, %v1050_v23  ;;  %v1051_v37 = vld [vmem:[%s3167_s6] sm:$0xff] }
 0x4bc   : > { %v2303_v19 = vpack.c.bf16 %v1672_v41, %v1669_v27 }
 0x4be   : > { %2304 = vmatpush1.bf16.msra.mxu1 %v2303_v19  ;;  %1824 = vmatmul.mubr.f32.gmra.mrb[10].mxu0 %v1049_v28 }
 0x4bf   : > { %1981 = vmatprep.mubr.f32.mxu0 %v2677_v6 }
 0x4c1   : > { %1895 = vmatmul.mubr.f32.vlgmr.msra.gmra.mrb[6].mxu1 %v1047_v24  ;;  %v1741_v52 = vpop.permute.xlu0 %1740 }
 0x4c2   : > { %2142 = vmatprep.mubr.msk.f32.mxu1 %vm882_vm2, %v1050_v23 }
 0x4c5   : > { %1900 = vmatmul.mubr.f32.gmra.mrb[8].mxu1 %v1049_v28 }
 0x4c6   : > { %2168 = vmatprep.mubr.msk.f32.mxu1 %vm882_vm2, %v1051_v37 }
 0x4c9   : > { %v1745_v32 = vpop.permute.xlu1 %1744 }
 0x58d   : > { %v1819_v30 = vpop.f32.mrb[8].mxu0 }
 0x58e   : > { %v1820_v31 = vadd.f32 %v1819_v30, %v1741_v52  ;;  %v1821_v35 = vpop.f32.mrb[9].mxu0 }
 0x58f   : > { %v1822_v29 = vadd.f32 %v1821_v35, %v1741_v52 }
 0x590   : > { %v1905_v25 = vmax.f32 %v1820_v31, 0.0 }
 0x591   : > { %v1825_v36 = vpop.f32.mrb[10].mxu0  ;;  %v1906_v44 = vmax.f32 %v1822_v29, 0.0 }
 0x592   : > { %v1826_v18 = vadd.f32 %v1825_v36, %v1745_v32  ;;  %v1827_v39 = vpop.f32.mrb[11].mxu0 }
 0x593   : > { %v1828_v40 = vadd.f32 %v1827_v39, %v1745_v32 }
 0x594   : > { %v1896_v38 = vpop.f32.mrb[6].mxu1  ;;  %v1908_v43 = vmax.f32 %v1826_v18, 0.0 }
 0x595   : > { %v1898_v42 = vpop.f32.mrb[7].mxu1  ;;  %v1897_v47 = vadd.f32 %v1896_v38, %v1741_v52  ;;  %v1909_v34 = vmax.f32 %v1828_v40, 0.0 }
 0x596   : > { %v2307_v48 = vpack.c.bf16 %v1908_v43, %v1905_v25 }
 0x597   : > { %v2305_v53 = vpack.c.bf16 %v1909_v34, %v1906_v44  ;;  %v1907_v0 = vmax.f32 %v1897_v47, 0.0 }
 0x598   : > { %v1901_v17 = vpop.f32.mrb[8].mxu1 }
 0x599   : > { %v1902_v49 = vadd.f32 %v1901_v17, %v1745_v32  ;;  %v1903_v51 = vpop.f32.mrb[9].mxu1  ;;  %2306 = vmatprep.subr.bf16.mxu0 %v2305_v53 }
 0x59a   : > { %2308 = vmatpush1.bf16.msra.mxu0 %v2307_v48 }
 0x59b   : > { %v1910_v3 = vmax.f32 %v1902_v49, 0.0 }
 0x59d   : > { %v2309_v13 = vpack.c.bf16 %v1910_v3, %v1907_v0  ;;  %2143 = vmatmul.mubr.msk.f32.vlgmr.msra.gmra.mrb[12].mxu0 %vm882_vm2, %v1051_v37 }
 0x59e   : > { %1987 = vmatprep.mubr.f32.mxu0 %v2677_v6 }
 0x59f   : > { %2310 = vmatprep.subr.bf16.mxu1 %v2309_v13 }
 0x5a0   : > { %2312 = vmatpush3.bf16.msra.mxu1 %v2309_v13 }
 0x5a1   : > { %2144 = vmatmul.mubr.msk.f32.gmra.mrb[14].mxu0 %vm882_vm2, %v1052_v33 }
 0x5a3   : > { %2169 = vmatmul.mubr.msk.f32.vlgmr.msra.gmra.mrb[10].mxu1 %vm882_vm2, %v1052_v33 }
 0x670   : > { %v1983_v20 = vpop.f32.mrb[12].mxu0 }
 0x671   : > { %2066 = vst [vmem:[%s278_s30] sm:$0xff] %v1983_v20  ;;  %v1985_v55 = vpop.f32.mrb[13].mxu0 }
 0x672   : > { %2067 = vst [vmem:[%s278_s30 + $0x8] sm:$0xff] %v1985_v55 }
 0x674   : > { %v1989_v56 = vpop.f32.mrb[14].mxu0 }
 0x675   : > { %v1990_v57 = vpop.f32.mrb[15].mxu0 }
 0x676   : > { %v2170_v54 = vpop.f32.mrb[10].mxu1 }
 0x677   : > { %v2058_v6 = vpop.f32.mrb[11].mxu1 }
 0x678   : > { %2068 = vst [vmem:[%s278_s30 + $0x10] sm:$0xff] %v2058_v6 }
 0x679 PF: > { %s17_s24 = sadd.s32 1, %s2673_s24  }
 0x67a   : > { %p14_p4 = scmp.ge.s32.totalorder %s17_s24, 4  }
 0x67c   :  { %16 = sbr.rel (!%p14_p4) target bundleno = 1 (0x1), region = 78 }

</bundles_post_ra>
